<compile_context>
chip_gen: v6e
topology: v6e:2x2x1
jax: 0.10.0
libtpu: 0.0.40
codegen_flags: <defaults>
</compile_context>

<pallas_src>
import functools

import jax
import jax.numpy as jnp
from jax.experimental import pallas as pl
from jax.experimental.pallas import tpu as pltpu

GAMMA = 1.0
TEMPERATURE = 5.0
_BALL_EPS = 4e-3           # geoopt float32 ball-boundary eps (curvature c == 1 baked in)
_MIN_NORM = 1e-15


def _round_up(x, m):
    return ((x + m - 1) // m) * m


# ----------------- math helpers (usable inside and outside kernels) -----------------

def _expmap0_c1(u):
    """Poincare-ball exponential map at the origin, curvature c == 1."""
    norm = jnp.maximum(jnp.sqrt(jnp.sum(u * u, axis=-1, keepdims=True)), _MIN_NORM)
    return jnp.tanh(norm) * u / norm


def _project_c1(x):
    """Project onto the open ball of radius (1 - eps), curvature c == 1."""
    norm = jnp.maximum(jnp.sqrt(jnp.sum(x * x, axis=-1, keepdims=True)), _MIN_NORM)
    maxnorm = 1.0 - _BALL_EPS
    return jnp.where(norm > maxnorm, x / norm * maxnorm, x)


def _softmax_rows(s):
    """Exact row softmax: the adjacency path is (T,T)-tiny and off the HBM-bound
    critical path, so no approx-reciprocal error compounding."""
    m = jnp.max(s, axis=-1, keepdims=True)
    e = jnp.exp(s - m)
    return e / jnp.sum(e, axis=-1, keepdims=True)


def _hyp_hawkes(t_half, q_w, k_w, w_in_t_scaled):
    """One HypHawkes head. `w_in_t_scaled` is linear_in.weight.T / d (host-prepared),
    so the 1/d score scale is folded into one small matmul."""
    q = jnp.dot(t_half, q_w, preferred_element_type=jnp.float32)
    k = jnp.dot(t_half, k_w, preferred_element_type=jnp.float32)
    q = _project_c1(_expmap0_c1(q))
    k = _project_c1(_expmap0_c1(k))
    q = jnp.dot(q, w_in_t_scaled, preferred_element_type=jnp.float32)   # linear_in / d
    scores = jax.lax.dot_general(q, k, (((1,), (1,)), ((), ())),        # q @ k.T
                                 preferred_element_type=jnp.float32)
    return _project_c1(_expmap0_c1(_softmax_rows(scores)))


# ------------------------------------- kernels --------------------------------------

def stats_adj_kernel(t_lo_ref, t_hi_ref, q1_ref, k1_ref, w1_ref,
                     q2_ref, k2_ref, w2_ref, topic_ref, word_ref,
                     m_ref, z_ref, adj_ref,
                     *, vocab_size, tile_v, tiles_per_split, need_mask):
    """Pass 1: per split, streaming row-max m and softmax denominator Z for
    beta = softmax(topic @ word.T, dim=1).  The tiny adjacency is fused under the
    first vocab step of each split (redundant per split so each core owns its own
    output block; the host reads adj[0])."""
    c = pl.program_id(0)
    j = pl.program_id(1)

    @pl.when(j == 0)
    def _init_and_adjacency():
        m_ref[...] = jnp.full(m_ref.shape, -jnp.inf, dtype=m_ref.dtype)
        z_ref[...] = jnp.zeros(z_ref.shape, dtype=z_ref.dtype)
        adj1 = _hyp_hawkes(t_lo_ref[...], q1_ref[...], k1_ref[...], w1_ref[...])
        adj2 = _hyp_hawkes(t_hi_ref[...], q2_ref[...], k2_ref[...], w2_ref[...])
        adj_ref[...] = _softmax_rows((adj1 + adj2) * (1.0 / TEMPERATURE))

    # word is stored transposed (E, tile_v): plain MXU matmul, lane-dense tiles.
    logits = jnp.dot(topic_ref[...], word_ref[...],
                     preferred_element_type=jnp.float32)          # (T, tile_v)

    def accumulate(lg):
        m_prev = m_ref[...]
        m_new = jnp.maximum(m_prev, jnp.max(lg, axis=-1, keepdims=True))
        z_ref[...] = z_ref[...] * jnp.exp(m_prev - m_new) + jnp.sum(
            jnp.exp(lg - m_new), axis=-1, keepdims=True)
        m_ref[...] = m_new

    if not need_mask:
        accumulate(logits)
    else:
        # Gate the padding mask to ragged tiles only (cheap insurance: saves the
        # iota/compare/select VPU passes on every full tile).
        tile_start = (c * tiles_per_split + j) * tile_v
        is_ragged = tile_start + tile_v > vocab_size

        @pl.when(is_ragged)
        def _masked():
            col = jax.lax.broadcasted_iota(jnp.int32, logits.shape, 1) + tile_start
            accumulate(jnp.where(col < vocab_size, logits, -jnp.inf))

        @pl.when(jnp.logical_not(is_ragged))
        def _full():
            accumulate(logits)


def theta_kernel(pi_ref, topic_ref, word_ref, m_ref, theta_ref):
    """Pass 2: theta_tile = pi_scaled @ exp(logits - m).  gamma and 1/Z are folded
    into pi_scaled host-side; padded vocab columns (>= V) fall outside the (B, V)
    output array and are dropped by the clipped block write, so no mask is needed."""
    logits = jnp.dot(topic_ref[...], word_ref[...],
                     preferred_element_type=jnp.float32)          # (T, tile_v)
    beta_un = jnp.exp(logits - m_ref[...])
    theta_ref[...] = jnp.dot(pi_ref[...], beta_un, preferred_element_type=jnp.float32)


def beta_kernel(topic_ref, word_ref, m_ref, zinv_ref, beta_ref):
    """Lazy beta materialization (only when the caller actually asks for it)."""
    logits = jnp.dot(topic_ref[...], word_ref[...],
                     preferred_element_type=jnp.float32)
    beta_ref[...] = jnp.exp(logits - m_ref[...]) * zinv_ref[...]


# ----------------------------------- host wrapper ------------------------------------

class GeneratorPallas:
    def __init__(self, vocab_size, emb_size, topic_num, key, *, tile_v=2048, tile_b=128):
        assert emb_size % 2 == 0, "emb_size must be even"
        half = emb_size // 2
        ks = jax.random.split(key, 8)
        u = functools.partial(jax.random.uniform, minval=-0.05, maxval=0.05,
                              dtype=jnp.float32)
        word = u(ks[0], (vocab_size, emb_size))       # xavier_init = U(-0.05, 0.05)
        topic = u(ks[1], (topic_num, emb_size))
        self.Q_vec_1 = u(ks[2], (half, half))
        self.K_vec_1 = u(ks[3], (half, half))
        self.Q_vec_2 = u(ks[4], (half, half))
        self.K_vec_2 = u(ks[5], (half, half))
        lim = 1.0 / (half ** 0.5)                     # HypHawkes.linear_in (bias=False)
        self.W_in_1 = jax.random.uniform(ks[6], (half, half), jnp.float32, -lim, lim)
        self.W_in_2 = jax.random.uniform(ks[7], (half, half), jnp.float32, -lim, lim)

        # --- vocab padding & tile sizing -------------------------------------------
        # Pad the vocab only to the 128-lane multiple (not to tile_v): padding to a
        # tile multiple would add up to tile_v-128 dead word-embed columns per
        # streaming pass (read twice).
        v_pad = _round_up(vocab_size, 128)
        tile_v = max(128, min(_round_up(tile_v, 128), v_pad))
        tile_b = max(8, _round_up(tile_b, 8))

        # VMEM sizing: the binding limit is the *scoped* budget we request via
        # vmem_limit_bytes (defaults 16 MiB v5e / 32 MiB v6e,v7x; physical 64 MiB on
        # v7x).  Double-buffered bf16 word tiles + a double-buffered (tile_b, tile_v)
        # f32 theta block dominate.
        def vmem_need(tv, tb):
            streamed = 2 * tv * (2 * emb_size + 4 * tb)             # word + theta
            resident = 2 * (tb * topic_num * 4 + topic_num * emb_size * 2)
            return streamed + resident + (4 << 20)                  # headroom/scratch
        budget = 40 << 20
        while vmem_need(tile_v, tile_b) > budget and tile_v > 512:
            tile_v = max(512, (tile_v // 2) // 128 * 128)
        while vmem_need(tile_v, tile_b) > budget and tile_b > 8:
            tile_b = max(8, tile_b // 2)
        self._vmem_limit = int(min(max(vmem_need(tile_v, tile_b) + (8 << 20), 32 << 20),
                                   60 << 20))

        nt = pl.cdiv(v_pad, tile_v)
        splits = 2 if nt >= 2 else 1                  # pass-1 core split (v7x megacore)
        tiles_per_split = pl.cdiv(nt, splits)
        coverage = splits * tiles_per_split * tile_v
        need_mask = coverage != vocab_size

        # --- parameters in kernel layout -------------------------------------------
        # word_embed stored TRANSPOSED (emb, vocab_pad) in bf16: lane-dense streaming
        # tiles, plain jnp.dot in-kernel (no per-tile transpose), smaller word-tile
        # VMEM footprint; all accumulation stays f32 via preferred_element_type.
        word_t = jnp.zeros((emb_size, v_pad), jnp.bfloat16)
        self.word_embed_t = word_t.at[:, :vocab_size].set(word.T.astype(jnp.bfloat16))
        self.topic_embed = topic.astype(jnp.bfloat16)

        # Host-side layout plumbing for the adjacency path: pre-split halves
        # (emb//2 split, cf. torch's hard-coded [:, :150]/[:, 150:]), pre-transpose
        # linear_in weights and fold the 1/d score scale into them.
        topic_f32 = self.topic_embed.astype(jnp.float32)
        self.topic_lo = topic_f32[:, :half]
        self.topic_hi = topic_f32[:, half:]
        self._W1_t_scaled = (self.W_in_1.T / float(half)).astype(jnp.float32)
        self._W2_t_scaled = (self.W_in_2.T / float(half)).astype(jnp.float32)

        self.vocab_size = vocab_size
        self.emb_size = emb_size
        self.topic_num = topic_num
        self.half = half
        self.tile_v = tile_v
        self.tile_b = tile_b
        self.v_pad = v_pad
        self.nt = nt
        self.splits = splits
        self.tiles_per_split = tiles_per_split
        self.need_mask = need_mask

        self.adjacency_matrix = None
        self.beta = None
        self.theta = None
        self.pi = None
        self._m = None
        self._z = None

        self._forward = self._build_forward()

    # ------------------------------------------------------------------ forward impl
    def _build_forward(self):
        T, E, H = self.topic_num, self.emb_size, self.half
        V = self.vocab_size
        tile_v, tile_b_cfg = self.tile_v, self.tile_b
        nt, splits, tps = self.nt, self.splits, self.tiles_per_split
        need_mask = self.need_mask
        vmem_limit = self._vmem_limit

        kern_p1 = functools.partial(stats_adj_kernel, vocab_size=V, tile_v=tile_v,
                                    tiles_per_split=tps, need_mask=need_mask)

        half_spec = pl.BlockSpec((T, H), lambda c, j: (0, 0))
        sq_spec = pl.BlockSpec((H, H), lambda c, j: (0, 0))
        topic_spec_p1 = pl.BlockSpec((T, E), lambda c, j: (0, 0))
        word_spec_p1 = pl.BlockSpec((E, tile_v), lambda c, j: (0, c * tps + j))
        stat_spec = pl.BlockSpec((None, T, 1), lambda c, j: (c, 0, 0))
        adj_spec = pl.BlockSpec((None, T, T), lambda c, j: (c, 0, 0))

        def fwd(x, t_lo, t_hi, q1, k1, w1t, q2, k2, w2t, topic, word_t):
            # ---- pass 1: streaming softmax stats (+ fused tiny adjacency) ----------
            m_s, z_s, adj_s = pl.pallas_call(
                kern_p1,
                grid=(splits, tps),
                in_specs=[half_spec, half_spec,
                          sq_spec, sq_spec, sq_spec, sq_spec, sq_spec, sq_spec,
                          topic_spec_p1, word_spec_p1],
                out_specs=(stat_spec, stat_spec, adj_spec),
                out_shape=(jax.ShapeDtypeStruct((splits, T, 1), jnp.float32),
                           jax.ShapeDtypeStruct((splits, T, 1), jnp.float32),
                           jax.ShapeDtypeStruct((splits, T, T), jnp.float32)),
                compiler_params=pltpu.CompilerParams(
                    dimension_semantics=("parallel", "arbitrary"),
                    vmem_limit_bytes=vmem_limit),
            )(t_lo, t_hi, q1, k1, w1t, q2, k2, w2t, topic, word_t)

            # Log-sum-exp combine of the tiny per-split partial stats.
            m = jnp.max(m_s, axis=0)                               # (T, 1)
            z = jnp.sum(z_s * jnp.exp(m_s - m), axis=0)            # (T, 1)
            adj = adj_s[0]

            # gamma and 1/Z folded into pi once (per-topic column scale).
            pi_scaled = (x * GAMMA) * jnp.transpose(1.0 / z)       # (B, T)

            # ---- pass 2: theta tiles.  grid = (vocab, batch) so every word tile is
            # fetched once regardless of batch size; both axes "parallel". ----------
            B = x.shape[0]
            tb = B if B <= tile_b_cfg else tile_b_cfg
            nb = pl.cdiv(B, tb)
            theta = pl.pallas_call(
                theta_kernel,
                grid=(nt, nb),
                in_specs=[pl.BlockSpec((tb, T), lambda j, i: (i, 0)),
                          pl.BlockSpec((T, E), lambda j, i: (0, 0)),
                          pl.BlockSpec((E, tile_v), lambda j, i: (0, j)),
                          pl.BlockSpec((T, 1), lambda j, i: (0, 0))],
                out_specs=pl.BlockSpec((tb, tile_v), lambda j, i: (i, j)),
                out_shape=jax.ShapeDtypeStruct((B, V), jnp.float32),  # no pad, no slice
                compiler_params=pltpu.CompilerParams(
                    dimension_semantics=("parallel", "parallel"),
                    vmem_limit_bytes=vmem_limit),
            )(pi_scaled, topic, word_t, m)
            return theta, adj, m, z

        return jax.jit(fwd)

    # ----------------------------------------------------------------------- API
    def __call__(self, x):
        theta, adj, m, z = self._forward(
            x, self.topic_lo, self.topic_hi,
            self.Q_vec_1, self.K_vec_1, self._W1_t_scaled,
            self.Q_vec_2, self.K_vec_2, self._W2_t_scaled,
            self.topic_embed, self.word_embed_t)
        self.adjacency_matrix = adj
        self.pi = x * GAMMA
        self._m, self._z = m, z
        self.beta = None       # materialized lazily (forward only needs theta)
        self.theta = theta
        return theta

    def get_topic_dist(self, level=0):
        if self.beta is not None:
            return self.beta
        assert self._m is not None, "call forward() first"
        T, E, tile_v, nt = self.topic_num, self.emb_size, self.tile_v, self.nt
        zinv = 1.0 / self._z
        beta = pl.pallas_call(
            beta_kernel,
            grid=(nt,),
            in_specs=[pl.BlockSpec((T, E), lambda j: (0, 0)),
                      pl.BlockSpec((E, tile_v), lambda j: (0, j)),
                      pl.BlockSpec((T, 1), lambda j: (0, 0)),
                      pl.BlockSpec((T, 1), lambda j: (0, 0))],
            out_specs=pl.BlockSpec((T, tile_v), lambda j: (0, j)),
            out_shape=jax.ShapeDtypeStruct((T, self.vocab_size), jnp.float32),
            compiler_params=pltpu.CompilerParams(
                dimension_semantics=("parallel",),
                vmem_limit_bytes=self._vmem_limit),
        )(self.topic_embed, self.word_embed_t, self._m, zinv)
        self.beta = beta
        return beta


# ---------------------------------------- main ----------------------------------------

if __name__ == "__main__":
    key = jax.random.PRNGKey(0)
    k_param, k_x = jax.random.split(key)

    # Ragged vocab (not 128-aligned) to exercise the 128-padding + masked last tile
    # and the partial (clipped) output writes.
    vocab_size, emb_size, topic_num, batch = 500, 32, 16, 8

    gen = GeneratorPallas(vocab_size, emb_size, topic_num, k_param, tile_v=256)
    x = jax.random.uniform(k_x, (batch, topic_num), dtype=jnp.float32)

    theta = gen(x)
    jax.block_until_ready(theta)
    adj = gen.adjacency_matrix
    beta = gen.get_topic_dist()
    jax.block_until_ready((adj, beta))

    # ------------------------- pure-JAX reference (same bf16 params) -------------------
    hp = jax.lax.Precision.HIGHEST
    topic_f32 = gen.topic_embed.astype(jnp.float32)
    word_f32 = gen.word_embed_t[:, :vocab_size].T.astype(jnp.float32)   # (V, E)
    beta_ref = jax.nn.softmax(jnp.dot(topic_f32, word_f32.T, precision=hp), axis=1)
    theta_ref = jnp.dot(x * GAMMA, beta_ref, precision=hp)

    def hyp_ref(th, qw, kw, w_in):
        q = jnp.dot(th, qw, precision=hp)
        k = jnp.dot(th, kw, precision=hp)
        q = _project_c1(_expmap0_c1(q))
        k = _project_c1(_expmap0_c1(k))
        q = jnp.dot(q, w_in.T, precision=hp)
        w = jax.nn.softmax(jnp.dot(q, k.T, precision=hp) / th.shape[1], axis=1)
        return _project_c1(_expmap0_c1(w))

    adj_ref = jax.nn.softmax(
        (hyp_ref(gen.topic_lo, gen.Q_vec_1, gen.K_vec_1, gen.W_in_1)
         + hyp_ref(gen.topic_hi, gen.Q_vec_2, gen.K_vec_2, gen.W_in_2)) / TEMPERATURE,
        axis=1)

    # ---------------------------------- checks -----------------------------------------
    assert theta.shape == (batch, vocab_size)
    assert adj.shape == (topic_num, topic_num)
    assert beta.shape == (topic_num, vocab_size)
    assert bool(jnp.all(jnp.isfinite(theta)))
    assert bool(jnp.all(jnp.isfinite(adj)))
    assert bool(jnp.allclose(theta, theta_ref, rtol=1e-3, atol=1e-4))
    assert bool(jnp.allclose(beta, beta_ref, rtol=1e-3, atol=1e-4))
    assert bool(jnp.allclose(jnp.sum(beta, axis=1), 1.0, atol=1e-3))
    # rows of theta sum to the row-sums of x because beta rows sum to 1
    assert bool(jnp.allclose(jnp.sum(theta, axis=1), jnp.sum(x, axis=1), atol=1e-3))
    assert bool(jnp.allclose(adj, adj_ref, atol=5e-3))

    print("KERNEL_OK")
</pallas_src>

<mosaic_0001>
module attributes {stable_mosaic.version = 11 : i64} {
  func.func @stats_adj_kernel(%arg0: i32, %arg1: i32, %arg2: memref<16x16xf32, #tpu.memory_space<vmem>>, %arg3: memref<16x16xf32, #tpu.memory_space<vmem>>, %arg4: memref<16x16xf32, #tpu.memory_space<vmem>>, %arg5: memref<16x16xf32, #tpu.memory_space<vmem>>, %arg6: memref<16x16xf32, #tpu.memory_space<vmem>>, %arg7: memref<16x16xf32, #tpu.memory_space<vmem>>, %arg8: memref<16x16xf32, #tpu.memory_space<vmem>>, %arg9: memref<16x16xf32, #tpu.memory_space<vmem>>, %arg10: memref<16x32xbf16, #tpu.memory_space<vmem>>, %arg11: memref<32x256xbf16, #tpu.memory_space<vmem>>, %arg12: memref<1x16x1xf32, #tpu.memory_space<vmem>>, %arg13: memref<1x16x1xf32, #tpu.memory_space<vmem>>, %arg14: memref<1x16x16xf32, #tpu.memory_space<vmem>>) attributes {dimension_semantics = [#tpu.dimension_semantics<parallel>, #tpu.dimension_semantics<arbitrary>], iteration_bounds = array<i64: 2, 1>, scalar_prefetch = 0 : i64, scratch_operands = 0 : i64, tpu.core_type = #tpu.core_type<tc>, window_params = [{pipeline_mode = #tpu.pipeline_mode<synchronous>, transform_indices = @transform_0, window_bounds = array<i64: 16, 16>}, {pipeline_mode = #tpu.pipeline_mode<synchronous>, transform_indices = @transform_1, window_bounds = array<i64: 16, 16>}, {pipeline_mode = #tpu.pipeline_mode<synchronous>, transform_indices = @transform_2, window_bounds = array<i64: 16, 16>}, {pipeline_mode = #tpu.pipeline_mode<synchronous>, transform_indices = @transform_3, window_bounds = array<i64: 16, 16>}, {pipeline_mode = #tpu.pipeline_mode<synchronous>, transform_indices = @transform_4, window_bounds = array<i64: 16, 16>}, {pipeline_mode = #tpu.pipeline_mode<synchronous>, transform_indices = @transform_5, window_bounds = array<i64: 16, 16>}, {pipeline_mode = #tpu.pipeline_mode<synchronous>, transform_indices = @transform_6, window_bounds = array<i64: 16, 16>}, {pipeline_mode = #tpu.pipeline_mode<synchronous>, transform_indices = @transform_7, window_bounds = array<i64: 16, 16>}, {pipeline_mode = #tpu.pipeline_mode<synchronous>, transform_indices = @transform_8, window_bounds = array<i64: 16, 32>}, {transform_indices = @transform_9, window_bounds = array<i64: 32, 256>}, {transform_indices = @transform_10, window_bounds = array<i64: 1, 16, 1>}, {transform_indices = @transform_11, window_bounds = array<i64: 1, 16, 1>}, {transform_indices = @transform_12, window_bounds = array<i64: 1, 16, 16>}]} {
    %c0_i32 = arith.constant 0 : i32
    %0 = arith.cmpi eq, %arg1, %c0_i32 : i32
    %1 = arith.extui %0 : i1 to i32
    %c0_i32_0 = arith.constant 0 : i32
    %2 = arith.cmpi ne, %1, %c0_i32_0 : i32
    scf.if %2 {
      %cst_7 = arith.constant 0xFF800000 : f32
      %16 = vector.broadcast %cst_7 : f32 to vector<16x1xf32>
      %c0_8 = arith.constant 0 : index
      %c0_9 = arith.constant 0 : index
      %c0_10 = arith.constant 0 : index
      %17 = vector.load %arg12[%c0_8, %c0_9, %c0_10] : memref<1x16x1xf32, #tpu.memory_space<vmem>>, vector<1x16x1xf32>
      %18 = vector.shape_cast %17 : vector<1x16x1xf32> to vector<16x1xf32>
      %19 = vector.shape_cast %16 : vector<16x1xf32> to vector<1x16x1xf32>
      tpu.vector_store %arg12[%c0_8, %c0_9, %c0_10], %19 {strides = array<i32>} : memref<1x16x1xf32, #tpu.memory_space<vmem>>, vector<1x16x1xf32>,
      %cst_11 = arith.constant 0.000000e+00 : f32
      %20 = vector.broadcast %cst_11 : f32 to vector<16x1xf32>
      %c0_12 = arith.constant 0 : index
      %c0_13 = arith.constant 0 : index
      %c0_14 = arith.constant 0 : index
      %21 = vector.load %arg13[%c0_12, %c0_13, %c0_14] : memref<1x16x1xf32, #tpu.memory_space<vmem>>, vector<1x16x1xf32>
      %22 = vector.shape_cast %21 : vector<1x16x1xf32> to vector<16x1xf32>
      %23 = vector.shape_cast %20 : vector<16x1xf32> to vector<1x16x1xf32>
      tpu.vector_store %arg13[%c0_12, %c0_13, %c0_14], %23 {strides = array<i32>} : memref<1x16x1xf32, #tpu.memory_space<vmem>>, vector<1x16x1xf32>,
      %c0_15 = arith.constant 0 : index
      %c0_16 = arith.constant 0 : index
      %24 = vector.load %arg2[%c0_15, %c0_16] : memref<16x16xf32, #tpu.memory_space<vmem>>, vector<16x16xf32>
      %c0_17 = arith.constant 0 : index
      %c0_18 = arith.constant 0 : index
      %25 = vector.load %arg4[%c0_17, %c0_18] : memref<16x16xf32, #tpu.memory_space<vmem>>, vector<16x16xf32>
      %c0_19 = arith.constant 0 : index
      %c0_20 = arith.constant 0 : index
      %26 = vector.load %arg5[%c0_19, %c0_20] : memref<16x16xf32, #tpu.memory_space<vmem>>, vector<16x16xf32>
      %c0_21 = arith.constant 0 : index
      %c0_22 = arith.constant 0 : index
      %27 = vector.load %arg6[%c0_21, %c0_22] : memref<16x16xf32, #tpu.memory_space<vmem>>, vector<16x16xf32>
      %cst_23 = arith.constant dense<0.000000e+00> : vector<16x16xf32>
      %28 = tpu.matmul %24, %25, %cst_23 {dimension_numbers = #tpu.dot_dimension_numbers<[1], [0], [0], [1], [0, 0, 1, 1], [], []>} : vector<16x16xf32>, vector<16x16xf32>, vector<16x16xf32> -> vector<16x16xf32>
      %cst_24 = arith.constant dense<0.000000e+00> : vector<16x16xf32>
      %29 = tpu.matmul %24, %26, %cst_24 {dimension_numbers = #tpu.dot_dimension_numbers<[1], [0], [0], [1], [0, 0, 1, 1], [], []>} : vector<16x16xf32>, vector<16x16xf32>, vector<16x16xf32> -> vector<16x16xf32>
      %30 = arith.mulf %28, %28 : vector<16x16xf32>
      %cst_25 = arith.constant dense<0.000000e+00> : vector<16xf32>
      %31 = vector.multi_reduction <add>, %30, %cst_25 [1] : vector<16x16xf32> to vector<16xf32>
      %32 = vector.shape_cast %31 : vector<16xf32> to vector<16x1xf32>
      %33 = math.sqrt %32 : vector<16x1xf32>
      %cst_26 = arith.constant 1.000000e-15 : f32
      %34 = vector.broadcast %cst_26 : f32 to vector<16x1xf32>
      %35 = arith.maximumf %33, %34 : vector<16x1xf32>
      %36 = math.tanh %35 : vector<16x1xf32>
      %37 = vector.broadcast %36 : vector<16x1xf32> to vector<16x16xf32>
      %38 = arith.mulf %37, %28 : vector<16x16xf32>
      %39 = vector.broadcast %35 : vector<16x1xf32> to vector<16x16xf32>
      %40 = arith.divf %38, %39 : vector<16x16xf32>
      %41 = arith.mulf %40, %40 : vector<16x16xf32>
      %cst_27 = arith.constant dense<0.000000e+00> : vector<16xf32>
      %42 = vector.multi_reduction <add>, %41, %cst_27 [1] : vector<16x16xf32> to vector<16xf32>
      %43 = vector.shape_cast %42 : vector<16xf32> to vector<16x1xf32>
      %44 = math.sqrt %43 : vector<16x1xf32>
      %cst_28 = arith.constant 1.000000e-15 : f32
      %45 = vector.broadcast %cst_28 : f32 to vector<16x1xf32>
      %46 = arith.maximumf %44, %45 : vector<16x1xf32>
      %cst_29 = arith.constant 0.995999991 : f32
      %47 = vector.broadcast %cst_29 : f32 to vector<16x1xf32>
      %48 = arith.cmpf ogt, %46, %47 : vector<16x1xf32>
      %49 = vector.broadcast %46 : vector<16x1xf32> to vector<16x16xf32>
      %50 = arith.divf %40, %49 : vector<16x16xf32>
      %cst_30 = arith.constant 0.995999991 : f32
      %51 = vector.broadcast %cst_30 : f32 to vector<16x16xf32>
      %52 = arith.mulf %50, %51 : vector<16x16xf32>
      %53 = vector.shape_cast %48 : vector<16x1xi1> to vector<16x1xi1>
      %54 = vector.broadcast %53 : vector<16x1xi1> to vector<16x16xi1>
      %55 = arith.select %54, %52, %40 : vector<16x16xi1>, vector<16x16xf32>
      %56 = arith.mulf %29, %29 : vector<16x16xf32>
      %cst_31 = arith.constant dense<0.000000e+00> : vector<16xf32>
      %57 = vector.multi_reduction <add>, %56, %cst_31 [1] : vector<16x16xf32> to vector<16xf32>
      %58 = vector.shape_cast %57 : vector<16xf32> to vector<16x1xf32>
      %59 = math.sqrt %58 : vector<16x1xf32>
      %cst_32 = arith.constant 1.000000e-15 : f32
      %60 = vector.broadcast %cst_32 : f32 to vector<16x1xf32>
      %61 = arith.maximumf %59, %60 : vector<16x1xf32>
      %62 = math.tanh %61 : vector<16x1xf32>
      %63 = vector.broadcast %62 : vector<16x1xf32> to vector<16x16xf32>
      %64 = arith.mulf %63, %29 : vector<16x16xf32>
      %65 = vector.broadcast %61 : vector<16x1xf32> to vector<16x16xf32>
      %66 = arith.divf %64, %65 : vector<16x16xf32>
      %67 = arith.mulf %66, %66 : vector<16x16xf32>
      %cst_33 = arith.constant dense<0.000000e+00> : vector<16xf32>
      %68 = vector.multi_reduction <add>, %67, %cst_33 [1] : vector<16x16xf32> to vector<16xf32>
      %69 = vector.shape_cast %68 : vector<16xf32> to vector<16x1xf32>
      %70 = math.sqrt %69 : vector<16x1xf32>
      %cst_34 = arith.constant 1.000000e-15 : f32
      %71 = vector.broadcast %cst_34 : f32 to vector<16x1xf32>
      %72 = arith.maximumf %70, %71 : vector<16x1xf32>
      %cst_35 = arith.constant 0.995999991 : f32
      %73 = vector.broadcast %cst_35 : f32 to vector<16x1xf32>
      %74 = arith.cmpf ogt, %72, %73 : vector<16x1xf32>
      %75 = vector.broadcast %72 : vector<16x1xf32> to vector<16x16xf32>
      %76 = arith.divf %66, %75 : vector<16x16xf32>
      %cst_36 = arith.constant 0.995999991 : f32
      %77 = vector.broadcast %cst_36 : f32 to vector<16x16xf32>
      %78 = arith.mulf %76, %77 : vector<16x16xf32>
      %79 = vector.shape_cast %74 : vector<16x1xi1> to vector<16x1xi1>
      %80 = vector.broadcast %79 : vector<16x1xi1> to vector<16x16xi1>
      %81 = arith.select %80, %78, %66 : vector<16x16xi1>, vector<16x16xf32>
      %cst_37 = arith.constant dense<0.000000e+00> : vector<16x16xf32>
      %82 = tpu.matmul %55, %27, %cst_37 {dimension_numbers = #tpu.dot_dimension_numbers<[1], [0], [0], [1], [0, 0, 1, 1], [], []>} : vector<16x16xf32>, vector<16x16xf32>, vector<16x16xf32> -> vector<16x16xf32>
      %cst_38 = arith.constant dense<0.000000e+00> : vector<16x16xf32>
      %83 = tpu.matmul %82, %81, %cst_38 {dimension_numbers = #tpu.dot_dimension_numbers<[1], [1], [0], [0], [0, 0, 1, 0], [], []>} : vector<16x16xf32>, vector<16x16xf32>, vector<16x16xf32> -> vector<16x16xf32>
      %cst_39 = arith.constant dense<0xFF800000> : vector<16xf32>
      %84 = vector.multi_reduction <maximumf>, %83, %cst_39 [1] : vector<16x16xf32> to vector<16xf32>
      %85 = vector.shape_cast %84 : vector<16xf32> to vector<16x1xf32>
      %86 = vector.broadcast %85 : vector<16x1xf32> to vector<16x16xf32>
      %87 = arith.subf %83, %86 : vector<16x16xf32>
      %88 = math.exp %87 : vector<16x16xf32>
      %cst_40 = arith.constant dense<0.000000e+00> : vector<16xf32>
      %89 = vector.multi_reduction <add>, %88, %cst_40 [1] : vector<16x16xf32> to vector<16xf32>
      %90 = vector.shape_cast %89 : vector<16xf32> to vector<16x1xf32>
      %91 = vector.broadcast %90 : vector<16x1xf32> to vector<16x16xf32>
      %92 = arith.divf %88, %91 : vector<16x16xf32>
      %93 = arith.mulf %92, %92 : vector<16x16xf32>
      %cst_41 = arith.constant dense<0.000000e+00> : vector<16xf32>
      %94 = vector.multi_reduction <add>, %93, %cst_41 [1] : vector<16x16xf32> to vector<16xf32>
      %95 = vector.shape_cast %94 : vector<16xf32> to vector<16x1xf32>
      %96 = math.sqrt %95 : vector<16x1xf32>
      %cst_42 = arith.constant 1.000000e-15 : f32
      %97 = vector.broadcast %cst_42 : f32 to vector<16x1xf32>
      %98 = arith.maximumf %96, %97 : vector<16x1xf32>
      %99 = math.tanh %98 : vector<16x1xf32>
      %100 = vector.broadcast %99 : vector<16x1xf32> to vector<16x16xf32>
      %101 = arith.mulf %100, %92 : vector<16x16xf32>
      %102 = vector.broadcast %98 : vector<16x1xf32> to vector<16x16xf32>
      %103 = arith.divf %101, %102 : vector<16x16xf32>
      %104 = arith.mulf %103, %103 : vector<16x16xf32>
      %cst_43 = arith.constant dense<0.000000e+00> : vector<16xf32>
      %105 = vector.multi_reduction <add>, %104, %cst_43 [1] : vector<16x16xf32> to vector<16xf32>
      %106 = vector.shape_cast %105 : vector<16xf32> to vector<16x1xf32>
      %107 = math.sqrt %106 : vector<16x1xf32>
      %cst_44 = arith.constant 1.000000e-15 : f32
      %108 = vector.broadcast %cst_44 : f32 to vector<16x1xf32>
      %109 = arith.maximumf %107, %108 : vector<16x1xf32>
      %cst_45 = arith.constant 0.995999991 : f32
      %110 = vector.broadcast %cst_45 : f32 to vector<16x1xf32>
      %111 = arith.cmpf ogt, %109, %110 : vector<16x1xf32>
      %112 = vector.broadcast %109 : vector<16x1xf32> to vector<16x16xf32>
      %113 = arith.divf %103, %112 : vector<16x16xf32>
      %cst_46 = arith.constant 0.995999991 : f32
      %114 = vector.broadcast %cst_46 : f32 to vector<16x16xf32>
      %115 = arith.mulf %113, %114 : vector<16x16xf32>
      %116 = vector.shape_cast %111 : vector<16x1xi1> to vector<16x1xi1>
      %117 = vector.broadcast %116 : vector<16x1xi1> to vector<16x16xi1>
      %118 = arith.select %117, %115, %103 : vector<16x16xi1>, vector<16x16xf32>
      %c0_47 = arith.constant 0 : index
      %c0_48 = arith.constant 0 : index
      %119 = vector.load %arg3[%c0_47, %c0_48] : memref<16x16xf32, #tpu.memory_space<vmem>>, vector<16x16xf32>
      %c0_49 = arith.constant 0 : index
      %c0_50 = arith.constant 0 : index
      %120 = vector.load %arg7[%c0_49, %c0_50] : memref<16x16xf32, #tpu.memory_space<vmem>>, vector<16x16xf32>
      %c0_51 = arith.constant 0 : index
      %c0_52 = arith.constant 0 : index
      %121 = vector.load %arg8[%c0_51, %c0_52] : memref<16x16xf32, #tpu.memory_space<vmem>>, vector<16x16xf32>
      %c0_53 = arith.constant 0 : index
      %c0_54 = arith.constant 0 : index
      %122 = vector.load %arg9[%c0_53, %c0_54] : memref<16x16xf32, #tpu.memory_space<vmem>>, vector<16x16xf32>
      %cst_55 = arith.constant dense<0.000000e+00> : vector<16x16xf32>
      %123 = tpu.matmul %119, %120, %cst_55 {dimension_numbers = #tpu.dot_dimension_numbers<[1], [0], [0], [1], [0, 0, 1, 1], [], []>} : vector<16x16xf32>, vector<16x16xf32>, vector<16x16xf32> -> vector<16x16xf32>
      %cst_56 = arith.constant dense<0.000000e+00> : vector<16x16xf32>
      %124 = tpu.matmul %119, %121, %cst_56 {dimension_numbers = #tpu.dot_dimension_numbers<[1], [0], [0], [1], [0, 0, 1, 1], [], []>} : vector<16x16xf32>, vector<16x16xf32>, vector<16x16xf32> -> vector<16x16xf32>
      %125 = arith.mulf %123, %123 : vector<16x16xf32>
      %cst_57 = arith.constant dense<0.000000e+00> : vector<16xf32>
      %126 = vector.multi_reduction <add>, %125, %cst_57 [1] : vector<16x16xf32> to vector<16xf32>
      %127 = vector.shape_cast %126 : vector<16xf32> to vector<16x1xf32>
      %128 = math.sqrt %127 : vector<16x1xf32>
      %cst_58 = arith.constant 1.000000e-15 : f32
      %129 = vector.broadcast %cst_58 : f32 to vector<16x1xf32>
      %130 = arith.maximumf %128, %129 : vector<16x1xf32>
      %131 = math.tanh %130 : vector<16x1xf32>
      %132 = vector.broadcast %131 : vector<16x1xf32> to vector<16x16xf32>
      %133 = arith.mulf %132, %123 : vector<16x16xf32>
      %134 = vector.broadcast %130 : vector<16x1xf32> to vector<16x16xf32>
      %135 = arith.divf %133, %134 : vector<16x16xf32>
      %136 = arith.mulf %135, %135 : vector<16x16xf32>
      %cst_59 = arith.constant dense<0.000000e+00> : vector<16xf32>
      %137 = vector.multi_reduction <add>, %136, %cst_59 [1] : vector<16x16xf32> to vector<16xf32>
      %138 = vector.shape_cast %137 : vector<16xf32> to vector<16x1xf32>
      %139 = math.sqrt %138 : vector<16x1xf32>
      %cst_60 = arith.constant 1.000000e-15 : f32
      %140 = vector.broadcast %cst_60 : f32 to vector<16x1xf32>
      %141 = arith.maximumf %139, %140 : vector<16x1xf32>
      %cst_61 = arith.constant 0.995999991 : f32
      %142 = vector.broadcast %cst_61 : f32 to vector<16x1xf32>
      %143 = arith.cmpf ogt, %141, %142 : vector<16x1xf32>
      %144 = vector.broadcast %141 : vector<16x1xf32> to vector<16x16xf32>
      %145 = arith.divf %135, %144 : vector<16x16xf32>
      %cst_62 = arith.constant 0.995999991 : f32
      %146 = vector.broadcast %cst_62 : f32 to vector<16x16xf32>
      %147 = arith.mulf %145, %146 : vector<16x16xf32>
      %148 = vector.shape_cast %143 : vector<16x1xi1> to vector<16x1xi1>
      %149 = vector.broadcast %148 : vector<16x1xi1> to vector<16x16xi1>
      %150 = arith.select %149, %147, %135 : vector<16x16xi1>, vector<16x16xf32>
      %151 = arith.mulf %124, %124 : vector<16x16xf32>
      %cst_63 = arith.constant dense<0.000000e+00> : vector<16xf32>
      %152 = vector.multi_reduction <add>, %151, %cst_63 [1] : vector<16x16xf32> to vector<16xf32>
      %153 = vector.shape_cast %152 : vector<16xf32> to vector<16x1xf32>
      %154 = math.sqrt %153 : vector<16x1xf32>
      %cst_64 = arith.constant 1.000000e-15 : f32
      %155 = vector.broadcast %cst_64 : f32 to vector<16x1xf32>
      %156 = arith.maximumf %154, %155 : vector<16x1xf32>
      %157 = math.tanh %156 : vector<16x1xf32>
      %158 = vector.broadcast %157 : vector<16x1xf32> to vector<16x16xf32>
      %159 = arith.mulf %158, %124 : vector<16x16xf32>
      %160 = vector.broadcast %156 : vector<16x1xf32> to vector<16x16xf32>
      %161 = arith.divf %159, %160 : vector<16x16xf32>
      %162 = arith.mulf %161, %161 : vector<16x16xf32>
      %cst_65 = arith.constant dense<0.000000e+00> : vector<16xf32>
      %163 = vector.multi_reduction <add>, %162, %cst_65 [1] : vector<16x16xf32> to vector<16xf32>
      %164 = vector.shape_cast %163 : vector<16xf32> to vector<16x1xf32>
      %165 = math.sqrt %164 : vector<16x1xf32>
      %cst_66 = arith.constant 1.000000e-15 : f32
      %166 = vector.broadcast %cst_66 : f32 to vector<16x1xf32>
      %167 = arith.maximumf %165, %166 : vector<16x1xf32>
      %cst_67 = arith.constant 0.995999991 : f32
      %168 = vector.broadcast %cst_67 : f32 to vector<16x1xf32>
      %169 = arith.cmpf ogt, %167, %168 : vector<16x1xf32>
      %170 = vector.broadcast %167 : vector<16x1xf32> to vector<16x16xf32>
      %171 = arith.divf %161, %170 : vector<16x16xf32>
      %cst_68 = arith.constant 0.995999991 : f32
      %172 = vector.broadcast %cst_68 : f32 to vector<16x16xf32>
      %173 = arith.mulf %171, %172 : vector<16x16xf32>
      %174 = vector.shape_cast %169 : vector<16x1xi1> to vector<16x1xi1>
      %175 = vector.broadcast %174 : vector<16x1xi1> to vector<16x16xi1>
      %176 = arith.select %175, %173, %161 : vector<16x16xi1>, vector<16x16xf32>
      %cst_69 = arith.constant dense<0.000000e+00> : vector<16x16xf32>
      %177 = tpu.matmul %150, %122, %cst_69 {dimension_numbers = #tpu.dot_dimension_numbers<[1], [0], [0], [1], [0, 0, 1, 1], [], []>} : vector<16x16xf32>, vector<16x16xf32>, vector<16x16xf32> -> vector<16x16xf32>
      %cst_70 = arith.constant dense<0.000000e+00> : vector<16x16xf32>
      %178 = tpu.matmul %177, %176, %cst_70 {dimension_numbers = #tpu.dot_dimension_numbers<[1], [1], [0], [0], [0, 0, 1, 0], [], []>} : vector<16x16xf32>, vector<16x16xf32>, vector<16x16xf32> -> vector<16x16xf32>
      %cst_71 = arith.constant dense<0xFF800000> : vector<16xf32>
      %179 = vector.multi_reduction <maximumf>, %178, %cst_71 [1] : vector<16x16xf32> to vector<16xf32>
      %180 = vector.shape_cast %179 : vector<16xf32> to vector<16x1xf32>
      %181 = vector.broadcast %180 : vector<16x1xf32> to vector<16x16xf32>
      %182 = arith.subf %178, %181 : vector<16x16xf32>
      %183 = math.exp %182 : vector<16x16xf32>
      %cst_72 = arith.constant dense<0.000000e+00> : vector<16xf32>
      %184 = vector.multi_reduction <add>, %183, %cst_72 [1] : vector<16x16xf32> to vector<16xf32>
      %185 = vector.shape_cast %184 : vector<16xf32> to vector<16x1xf32>
      %186 = vector.broadcast %185 : vector<16x1xf32> to vector<16x16xf32>
      %187 = arith.divf %183, %186 : vector<16x16xf32>
      %188 = arith.mulf %187, %187 : vector<16x16xf32>
      %cst_73 = arith.constant dense<0.000000e+00> : vector<16xf32>
      %189 = vector.multi_reduction <add>, %188, %cst_73 [1] : vector<16x16xf32> to vector<16xf32>
      %190 = vector.shape_cast %189 : vector<16xf32> to vector<16x1xf32>
      %191 = math.sqrt %190 : vector<16x1xf32>
      %cst_74 = arith.constant 1.000000e-15 : f32
      %192 = vector.broadcast %cst_74 : f32 to vector<16x1xf32>
      %193 = arith.maximumf %191, %192 : vector<16x1xf32>
      %194 = math.tanh %193 : vector<16x1xf32>
      %195 = vector.broadcast %194 : vector<16x1xf32> to vector<16x16xf32>
      %196 = arith.mulf %195, %187 : vector<16x16xf32>
      %197 = vector.broadcast %193 : vector<16x1xf32> to vector<16x16xf32>
      %198 = arith.divf %196, %197 : vector<16x16xf32>
      %199 = arith.mulf %198, %198 : vector<16x16xf32>
      %cst_75 = arith.constant dense<0.000000e+00> : vector<16xf32>
      %200 = vector.multi_reduction <add>, %199, %cst_75 [1] : vector<16x16xf32> to vector<16xf32>
      %201 = vector.shape_cast %200 : vector<16xf32> to vector<16x1xf32>
      %202 = math.sqrt %201 : vector<16x1xf32>
      %cst_76 = arith.constant 1.000000e-15 : f32
      %203 = vector.broadcast %cst_76 : f32 to vector<16x1xf32>
      %204 = arith.maximumf %202, %203 : vector<16x1xf32>
      %cst_77 = arith.constant 0.995999991 : f32
      %205 = vector.broadcast %cst_77 : f32 to vector<16x1xf32>
      %206 = arith.cmpf ogt, %204, %205 : vector<16x1xf32>
      %207 = vector.broadcast %204 : vector<16x1xf32> to vector<16x16xf32>
      %208 = arith.divf %198, %207 : vector<16x16xf32>
      %cst_78 = arith.constant 0.995999991 : f32
      %209 = vector.broadcast %cst_78 : f32 to vector<16x16xf32>
      %210 = arith.mulf %208, %209 : vector<16x16xf32>
      %211 = vector.shape_cast %206 : vector<16x1xi1> to vector<16x1xi1>
      %212 = vector.broadcast %211 : vector<16x1xi1> to vector<16x16xi1>
      %213 = arith.select %212, %210, %198 : vector<16x16xi1>, vector<16x16xf32>
      %214 = arith.addf %118, %213 : vector<16x16xf32>
      %cst_79 = arith.constant 2.000000e-01 : f32
      %215 = vector.broadcast %cst_79 : f32 to vector<16x16xf32>
      %216 = arith.mulf %214, %215 : vector<16x16xf32>
      %cst_80 = arith.constant dense<0xFF800000> : vector<16xf32>
      %217 = vector.multi_reduction <maximumf>, %216, %cst_80 [1] : vector<16x16xf32> to vector<16xf32>
      %218 = vector.shape_cast %217 : vector<16xf32> to vector<16x1xf32>
      %219 = vector.broadcast %218 : vector<16x1xf32> to vector<16x16xf32>
      %220 = arith.subf %216, %219 : vector<16x16xf32>
      %221 = math.exp %220 : vector<16x16xf32>
      %cst_81 = arith.constant dense<0.000000e+00> : vector<16xf32>
      %222 = vector.multi_reduction <add>, %221, %cst_81 [1] : vector<16x16xf32> to vector<16xf32>
      %223 = vector.shape_cast %222 : vector<16xf32> to vector<16x1xf32>
      %224 = vector.broadcast %223 : vector<16x1xf32> to vector<16x16xf32>
      %225 = arith.divf %221, %224 : vector<16x16xf32>
      %c0_82 = arith.constant 0 : index
      %c0_83 = arith.constant 0 : index
      %c0_84 = arith.constant 0 : index
      %226 = vector.load %arg14[%c0_82, %c0_83, %c0_84] : memref<1x16x16xf32, #tpu.memory_space<vmem>>, vector<1x16x16xf32>
      %227 = vector.shape_cast %226 : vector<1x16x16xf32> to vector<16x16xf32>
      %228 = vector.shape_cast %225 : vector<16x16xf32> to vector<1x16x16xf32>
      tpu.vector_store %arg14[%c0_82, %c0_83, %c0_84], %228 {strides = array<i32>} : memref<1x16x16xf32, #tpu.memory_space<vmem>>, vector<1x16x16xf32>,
    } else {
    }
    %c0 = arith.constant 0 : index
    %c0_1 = arith.constant 0 : index
    %3 = vector.load %arg10[%c0, %c0_1] : memref<16x32xbf16, #tpu.memory_space<vmem>>, vector<16x32xbf16>
    %c0_2 = arith.constant 0 : index
    %c0_3 = arith.constant 0 : index
    %4 = vector.load %arg11[%c0_2, %c0_3] : memref<32x256xbf16, #tpu.memory_space<vmem>>, vector<32x256xbf16>
    %cst = arith.constant dense<0.000000e+00> : vector<16x256xf32>
    %5 = tpu.matmul %3, %4, %cst {dimension_numbers = #tpu.dot_dimension_numbers<[1], [0], [0], [1], [0, 0, 1, 1], [], []>} : vector<16x32xbf16>, vector<32x256xbf16>, vector<16x256xf32> -> vector<16x256xf32>
    %c1_i32 = arith.constant 1 : i32
    %6 = arith.muli %arg0, %c1_i32 : i32
    %7 = arith.addi %6, %arg1 : i32
    %c256_i32 = arith.constant 256 : i32
    %8 = arith.muli %7, %c256_i32 : i32
    %c256_i32_4 = arith.constant 256 : i32
    %9 = arith.addi %8, %c256_i32_4 : i32
    %c500_i32 = arith.constant 500 : i32
    %10 = arith.cmpi sgt, %9, %c500_i32 : i32
    %11 = arith.extui %10 : i1 to i32
    %c0_i32_5 = arith.constant 0 : i32
    %12 = arith.cmpi ne, %11, %c0_i32_5 : i32
    scf.if %12 {
      %16 = tpu.iota {dimensions = array<i32: 1>} : vector<16x256xi32>
      %17 = vector.broadcast %8 : i32 to vector<16x256xi32>
      %18 = arith.addi %16, %17 : vector<16x256xi32>
      %c500_i32_7 = arith.constant 500 : i32
      %19 = vector.broadcast %c500_i32_7 : i32 to vector<16x256xi32>
      %20 = arith.cmpi slt, %18, %19 : vector<16x256xi32>
      %cst_8 = arith.constant 0xFF800000 : f32
      %21 = vector.broadcast %cst_8 : f32 to vector<16x256xf32>
      %22 = arith.select %20, %5, %21 : vector<16x256xi1>, vector<16x256xf32>
      %c0_9 = arith.constant 0 : index
      %c0_10 = arith.constant 0 : index
      %c0_11 = arith.constant 0 : index
      %23 = vector.load %arg12[%c0_9, %c0_10, %c0_11] : memref<1x16x1xf32, #tpu.memory_space<vmem>>, vector<1x16x1xf32>
      %24 = vector.shape_cast %23 : vector<1x16x1xf32> to vector<16x1xf32>
      %cst_12 = arith.constant dense<0xFF800000> : vector<16xf32>
      %25 = vector.multi_reduction <maximumf>, %22, %cst_12 [1] : vector<16x256xf32> to vector<16xf32>
      %26 = vector.shape_cast %25 : vector<16xf32> to vector<16x1xf32>
      %27 = arith.maximumf %24, %26 : vector<16x1xf32>
      %c0_13 = arith.constant 0 : index
      %c0_14 = arith.constant 0 : index
      %c0_15 = arith.constant 0 : index
      %28 = vector.load %arg13[%c0_13, %c0_14, %c0_15] : memref<1x16x1xf32, #tpu.memory_space<vmem>>, vector<1x16x1xf32>
      %29 = vector.shape_cast %28 : vector<1x16x1xf32> to vector<16x1xf32>
      %30 = arith.subf %24, %27 : vector<16x1xf32>
      %31 = math.exp %30 : vector<16x1xf32>
      %32 = arith.mulf %29, %31 : vector<16x1xf32>
      %33 = vector.broadcast %27 : vector<16x1xf32> to vector<16x256xf32>
      %34 = arith.subf %22, %33 : vector<16x256xf32>
      %35 = math.exp %34 : vector<16x256xf32>
      %cst_16 = arith.constant dense<0.000000e+00> : vector<16xf32>
      %36 = vector.multi_reduction <add>, %35, %cst_16 [1] : vector<16x256xf32> to vector<16xf32>
      %37 = vector.shape_cast %36 : vector<16xf32> to vector<16x1xf32>
      %38 = arith.addf %32, %37 : vector<16x1xf32>
      %c0_17 = arith.constant 0 : index
      %c0_18 = arith.constant 0 : index
      %c0_19 = arith.constant 0 : index
      %39 = vector.load %arg13[%c0_17, %c0_18, %c0_19] : memref<1x16x1xf32, #tpu.memory_space<vmem>>, vector<1x16x1xf32>
      %40 = vector.shape_cast %39 : vector<1x16x1xf32> to vector<16x1xf32>
      %41 = vector.shape_cast %38 : vector<16x1xf32> to vector<1x16x1xf32>
      tpu.vector_store %arg13[%c0_17, %c0_18, %c0_19], %41 {strides = array<i32>} : memref<1x16x1xf32, #tpu.memory_space<vmem>>, vector<1x16x1xf32>,
      %c0_20 = arith.constant 0 : index
      %c0_21 = arith.constant 0 : index
      %c0_22 = arith.constant 0 : index
      %42 = vector.load %arg12[%c0_20, %c0_21, %c0_22] : memref<1x16x1xf32, #tpu.memory_space<vmem>>, vector<1x16x1xf32>
      %43 = vector.shape_cast %42 : vector<1x16x1xf32> to vector<16x1xf32>
      %44 = vector.shape_cast %27 : vector<16x1xf32> to vector<1x16x1xf32>
      tpu.vector_store %arg12[%c0_20, %c0_21, %c0_22], %44 {strides = array<i32>} : memref<1x16x1xf32, #tpu.memory_space<vmem>>, vector<1x16x1xf32>,
    } else {
    }
    %true = arith.constant true
    %13 = arith.xori %10, %true : i1
    %14 = arith.extui %13 : i1 to i32
    %c0_i32_6 = arith.constant 0 : i32
    %15 = arith.cmpi ne, %14, %c0_i32_6 : i32
    scf.if %15 {
      %c0_7 = arith.constant 0 : index
      %c0_8 = arith.constant 0 : index
      %c0_9 = arith.constant 0 : index
      %16 = vector.load %arg12[%c0_7, %c0_8, %c0_9] : memref<1x16x1xf32, #tpu.memory_space<vmem>>, vector<1x16x1xf32>
      %17 = vector.shape_cast %16 : vector<1x16x1xf32> to vector<16x1xf32>
      %cst_10 = arith.constant dense<0xFF800000> : vector<16xf32>
      %18 = vector.multi_reduction <maximumf>, %5, %cst_10 [1] : vector<16x256xf32> to vector<16xf32>
      %19 = vector.shape_cast %18 : vector<16xf32> to vector<16x1xf32>
      %20 = arith.maximumf %17, %19 : vector<16x1xf32>
      %c0_11 = arith.constant 0 : index
      %c0_12 = arith.constant 0 : index
      %c0_13 = arith.constant 0 : index
      %21 = vector.load %arg13[%c0_11, %c0_12, %c0_13] : memref<1x16x1xf32, #tpu.memory_space<vmem>>, vector<1x16x1xf32>
      %22 = vector.shape_cast %21 : vector<1x16x1xf32> to vector<16x1xf32>
      %23 = arith.subf %17, %20 : vector<16x1xf32>
      %24 = math.exp %23 : vector<16x1xf32>
      %25 = arith.mulf %22, %24 : vector<16x1xf32>
      %26 = vector.broadcast %20 : vector<16x1xf32> to vector<16x256xf32>
      %27 = arith.subf %5, %26 : vector<16x256xf32>
      %28 = math.exp %27 : vector<16x256xf32>
      %cst_14 = arith.constant dense<0.000000e+00> : vector<16xf32>
      %29 = vector.multi_reduction <add>, %28, %cst_14 [1] : vector<16x256xf32> to vector<16xf32>
      %30 = vector.shape_cast %29 : vector<16xf32> to vector<16x1xf32>
      %31 = arith.addf %25, %30 : vector<16x1xf32>
      %c0_15 = arith.constant 0 : index
      %c0_16 = arith.constant 0 : index
      %c0_17 = arith.constant 0 : index
      %32 = vector.load %arg13[%c0_15, %c0_16, %c0_17] : memref<1x16x1xf32, #tpu.memory_space<vmem>>, vector<1x16x1xf32>
      %33 = vector.shape_cast %32 : vector<1x16x1xf32> to vector<16x1xf32>
      %34 = vector.shape_cast %31 : vector<16x1xf32> to vector<1x16x1xf32>
      tpu.vector_store %arg13[%c0_15, %c0_16, %c0_17], %34 {strides = array<i32>} : memref<1x16x1xf32, #tpu.memory_space<vmem>>, vector<1x16x1xf32>,
      %c0_18 = arith.constant 0 : index
      %c0_19 = arith.constant 0 : index
      %c0_20 = arith.constant 0 : index
      %35 = vector.load %arg12[%c0_18, %c0_19, %c0_20] : memref<1x16x1xf32, #tpu.memory_space<vmem>>, vector<1x16x1xf32>
      %36 = vector.shape_cast %35 : vector<1x16x1xf32> to vector<16x1xf32>
      %37 = vector.shape_cast %20 : vector<16x1xf32> to vector<1x16x1xf32>
      tpu.vector_store %arg12[%c0_18, %c0_19, %c0_20], %37 {strides = array<i32>} : memref<1x16x1xf32, #tpu.memory_space<vmem>>, vector<1x16x1xf32>,
    } else {
    }
    return
  }
  func.func @transform_0(%arg0: i32, %arg1: i32) -> (i32, i32) {
    %c0_i32 = arith.constant 0 : i32
    %c0_i32_0 = arith.constant 0 : i32
    %c0_i32_1 = arith.constant 0 : i32
    return %c0_i32, %c0_i32_0 : i32, i32
  }
  func.func @transform_1(%arg0: i32, %arg1: i32) -> (i32, i32) {
    %c0_i32 = arith.constant 0 : i32
    %c0_i32_0 = arith.constant 0 : i32
    %c0_i32_1 = arith.constant 0 : i32
    return %c0_i32, %c0_i32_0 : i32, i32
  }
  func.func @transform_2(%arg0: i32, %arg1: i32) -> (i32, i32) {
    %c0_i32 = arith.constant 0 : i32
    %c0_i32_0 = arith.constant 0 : i32
    %c0_i32_1 = arith.constant 0 : i32
    return %c0_i32, %c0_i32_0 : i32, i32
  }
  func.func @transform_3(%arg0: i32, %arg1: i32) -> (i32, i32) {
    %c0_i32 = arith.constant 0 : i32
    %c0_i32_0 = arith.constant 0 : i32
    %c0_i32_1 = arith.constant 0 : i32
    return %c0_i32, %c0_i32_0 : i32, i32
  }
  func.func @transform_4(%arg0: i32, %arg1: i32) -> (i32, i32) {
    %c0_i32 = arith.constant 0 : i32
    %c0_i32_0 = arith.constant 0 : i32
    %c0_i32_1 = arith.constant 0 : i32
    return %c0_i32, %c0_i32_0 : i32, i32
  }
  func.func @transform_5(%arg0: i32, %arg1: i32) -> (i32, i32) {
    %c0_i32 = arith.constant 0 : i32
    %c0_i32_0 = arith.constant 0 : i32
    %c0_i32_1 = arith.constant 0 : i32
    return %c0_i32, %c0_i32_0 : i32, i32
  }
  func.func @transform_6(%arg0: i32, %arg1: i32) -> (i32, i32) {
    %c0_i32 = arith.constant 0 : i32
    %c0_i32_0 = arith.constant 0 : i32
    %c0_i32_1 = arith.constant 0 : i32
    return %c0_i32, %c0_i32_0 : i32, i32
  }
  func.func @transform_7(%arg0: i32, %arg1: i32) -> (i32, i32) {
    %c0_i32 = arith.constant 0 : i32
    %c0_i32_0 = arith.constant 0 : i32
    %c0_i32_1 = arith.constant 0 : i32
    return %c0_i32, %c0_i32_0 : i32, i32
  }
  func.func @transform_8(%arg0: i32, %arg1: i32) -> (i32, i32) {
    %c0_i32 = arith.constant 0 : i32
    %c0_i32_0 = arith.constant 0 : i32
    %c0_i32_1 = arith.constant 0 : i32
    return %c0_i32, %c0_i32_0 : i32, i32
  }
  func.func @transform_9(%arg0: i32, %arg1: i32) -> (i32, i32) {
    %c1_i32 = arith.constant 1 : i32
    %0 = arith.muli %arg0, %c1_i32 : i32
    %1 = arith.addi %0, %arg1 : i32
    %c0_i32 = arith.constant 0 : i32
    %c0_i32_0 = arith.constant 0 : i32
    return %c0_i32, %1 : i32, i32
  }
  func.func @transform_10(%arg0: i32, %arg1: i32) -> (i32, i32, i32) {
    %c0_i32 = arith.constant 0 : i32
    %c0_i32_0 = arith.constant 0 : i32
    %c0_i32_1 = arith.constant 0 : i32
    return %arg0, %c0_i32, %c0_i32_0 : i32, i32, i32
  }
  func.func @transform_11(%arg0: i32, %arg1: i32) -> (i32, i32, i32) {
    %c0_i32 = arith.constant 0 : i32
    %c0_i32_0 = arith.constant 0 : i32
    %c0_i32_1 = arith.constant 0 : i32
    return %arg0, %c0_i32, %c0_i32_0 : i32, i32, i32
  }
  func.func @transform_12(%arg0: i32, %arg1: i32) -> (i32, i32, i32) {
    %c0_i32 = arith.constant 0 : i32
    %c0_i32_0 = arith.constant 0 : i32
    %c0_i32_1 = arith.constant 0 : i32
    return %arg0, %c0_i32, %c0_i32_0 : i32, i32, i32
  }
}

module attributes {stable_mosaic.version = 11 : i64} {
  func.func @theta_kernel(%arg0: i32, %arg1: i32, %arg2: memref<8x16xf32, #tpu.memory_space<vmem>>, %arg3: memref<16x32xbf16, #tpu.memory_space<vmem>>, %arg4: memref<32x256xbf16, #tpu.memory_space<vmem>>, %arg5: memref<16x1xf32, #tpu.memory_space<vmem>>, %arg6: memref<8x256xf32, #tpu.memory_space<vmem>>) attributes {dimension_semantics = [#tpu.dimension_semantics<parallel>, #tpu.dimension_semantics<parallel>], iteration_bounds = array<i64: 2, 1>, scalar_prefetch = 0 : i64, scratch_operands = 0 : i64, tpu.core_type = #tpu.core_type<tc>, window_params = [{transform_indices = @transform_0, window_bounds = array<i64: 8, 16>}, {pipeline_mode = #tpu.pipeline_mode<synchronous>, transform_indices = @transform_1, window_bounds = array<i64: 16, 32>}, {transform_indices = @transform_2, window_bounds = array<i64: 32, 256>}, {pipeline_mode = #tpu.pipeline_mode<synchronous>, transform_indices = @transform_3, window_bounds = array<i64: 16, 1>}, {transform_indices = @transform_4, window_bounds = array<i64: 8, 256>}]} {
    %c0 = arith.constant 0 : index
    %c0_0 = arith.constant 0 : index
    %0 = vector.load %arg3[%c0, %c0_0] : memref<16x32xbf16, #tpu.memory_space<vmem>>, vector<16x32xbf16>
    %c0_1 = arith.constant 0 : index
    %c0_2 = arith.constant 0 : index
    %1 = vector.load %arg4[%c0_1, %c0_2] : memref<32x256xbf16, #tpu.memory_space<vmem>>, vector<32x256xbf16>
    %cst = arith.constant dense<0.000000e+00> : vector<16x256xf32>
    %2 = tpu.matmul %0, %1, %cst {dimension_numbers = #tpu.dot_dimension_numbers<[1], [0], [0], [1], [0, 0, 1, 1], [], []>} : vector<16x32xbf16>, vector<32x256xbf16>, vector<16x256xf32> -> vector<16x256xf32>
    %c0_3 = arith.constant 0 : index
    %c0_4 = arith.constant 0 : index
    %3 = vector.load %arg5[%c0_3, %c0_4] : memref<16x1xf32, #tpu.memory_space<vmem>>, vector<16x1xf32>
    %4 = vector.broadcast %3 : vector<16x1xf32> to vector<16x256xf32>
    %5 = arith.subf %2, %4 : vector<16x256xf32>
    %6 = math.exp %5 : vector<16x256xf32>
    %c0_5 = arith.constant 0 : index
    %c0_6 = arith.constant 0 : index
    %7 = vector.load %arg2[%c0_5, %c0_6] : memref<8x16xf32, #tpu.memory_space<vmem>>, vector<8x16xf32>
    %cst_7 = arith.constant dense<0.000000e+00> : vector<8x256xf32>
    %8 = tpu.matmul %7, %6, %cst_7 {dimension_numbers = #tpu.dot_dimension_numbers<[1], [0], [0], [1], [0, 0, 1, 1], [], []>} : vector<8x16xf32>, vector<16x256xf32>, vector<8x256xf32> -> vector<8x256xf32>
    %c0_8 = arith.constant 0 : index
    %c0_9 = arith.constant 0 : index
    %9 = vector.load %arg6[%c0_8, %c0_9] : memref<8x256xf32, #tpu.memory_space<vmem>>, vector<8x256xf32>
    tpu.vector_store %arg6[%c0_8, %c0_9], %8 {strides = array<i32>} : memref<8x256xf32, #tpu.memory_space<vmem>>, vector<8x256xf32>,
    return
  }
  func.func @transform_0(%arg0: i32, %arg1: i32) -> (i32, i32) {
    %c0_i32 = arith.constant 0 : i32
    %c0_i32_0 = arith.constant 0 : i32
    return %arg1, %c0_i32 : i32, i32
  }
  func.func @transform_1(%arg0: i32, %arg1: i32) -> (i32, i32) {
    %c0_i32 = arith.constant 0 : i32
    %c0_i32_0 = arith.constant 0 : i32
    %c0_i32_1 = arith.constant 0 : i32
    return %c0_i32, %c0_i32_0 : i32, i32
  }
  func.func @transform_2(%arg0: i32, %arg1: i32) -> (i32, i32) {
    %c0_i32 = arith.constant 0 : i32
    %c0_i32_0 = arith.constant 0 : i32
    return %c0_i32, %arg0 : i32, i32
  }
  func.func @transform_3(%arg0: i32, %arg1: i32) -> (i32, i32) {
    %c0_i32 = arith.constant 0 : i32
    %c0_i32_0 = arith.constant 0 : i32
    %c0_i32_1 = arith.constant 0 : i32
    return %c0_i32, %c0_i32_0 : i32, i32
  }
  func.func @transform_4(%arg0: i32, %arg1: i32) -> (i32, i32) {
    %c0_i32 = arith.constant 0 : i32
    return %arg1, %arg0 : i32, i32
  }
}

</mosaic_0001>

<bundles_post_ra>
// kernel: fwd.3
= control target key start
LH: loop header
LB: loop body
LE: loop exit
PB: predicated region body
PF: predicated region fallthrough
CT: control target
= control target key end

     0   :  { %9 = vsyncpa [#allocation4], 0  ;;  %s897_s0 = inlined_call_operand.vmem [shape: f32[8,16], index: 0, kind: input, shape index: {}]   ;;  %s898_s1 = inlined_call_operand.vmem [shape: bf16[16,32], index: 1, kind: input, shape index: {}]   ;;  %s899_s2 = inlined_call_operand.vmem [shape: bf16[32,512], index: 2, kind: input, shape index: {}]   ;;  %s900_s3 = inlined_call_operand.vmem [shape: f32[16,1], index: 3, kind: input, shape index: {}]   ;;  %s901_s4 = inlined_call_operand.hbm [shape: f32[8,500], index: 4, kind: output, shape index: {}]  }
   0x1   :  { %11 = vsyncpa [#allocation4 + $0x1], 0  ;;  %s770_s15 = smov 0   ;;  %s772_s16 = smov 0  }
   0x2   :  { %s774_s17 = smov 0   ;;  %s776_s18 = smov 0  }
   0x3   :  { %s778_s19 = smov 0   ;;  %s780_s20 = smov 0  }
   0x4 LB: > { %s566_s21 = sadd.s32 4294967295, %s740_s20   ;;  %s567_s22 = sadd.s32 4294967294, %s740_s20   ;;  %s740_s20 = sphi %s780_s20, %s17_s20   ;;  %s736_s19 = sphi %s778_s19, %s910_s19   ;;  %s732_s18 = sphi %s776_s18, %s909_s18   ;;  %s728_s17 = sphi %s774_s17, %s908_s17   ;;  %s724_s16 = sphi %s772_s16, %s907_s16   ;;  %s720_s15 = sphi %s770_s15, %s906_s15  }
   0x5   : > { %s29_s23 = sadd.s32 1, %s736_s19  ;;  %s83_s24 = sadd.s32 1, %s728_s17 }
   0x6   : > { %p31_p0 = scmp.ge.s32.totalorder %s29_s23, 2  ;;  %p90_p1 = scmp.ne.s32.totalorder %s728_s17, %s724_s16 }
   0x7   : > { %p91_p2 = scmp.eq.s32.totalorder %s740_s20, 0  ;;  %p143_p3 = scmp.eq.s32.totalorder %s566_s21, 1 }
   0x8   : > { %s912_s23 = smov (%p31_p0, %s29_s23), 0  ;;  %p148_p6 = scmp.ne.s32.totalorder %s724_s16, %s720_s15 }
   0x9   : > { %p92_p4 = por %p91_p2, %p90_p1  ;;  %p809_p5 = por %p143_p3, %p90_p1 }
   0xa   : > { %s80_s26 = ssub.s32 %s736_s19, %s912_s23  ;;  %p149_p8 = scmp.eq.s32.totalorder %s567_s22, 1 }
   0xb   : > { %p81_p7 = scmp.eq.s32.totalorder %s80_s26, 0  ;;  %p902_p10 = scmp.ge.s32.totalorder %s740_s20, 2 }
   0xc   : > { %p820_p9 = por %p149_p8, %p148_p6 }
   0xd   : > { %s818_s27 = scalar_select %p81_p7, %s728_s17, %s83_s24  }
   0xe   : > { %178 = sbr.rel (%p902_p10) target bundleno = 25 (0x19), region = 28 }
  0x13   : > { %181 = sbr.rel (!%p92_p4) target bundleno = 25 (0x19), region = 32  ;;  %s183_s29 = sand.u32 (%p92_p4), 1, %s728_s17  }
  0x14   : > { %s589_s30 = sshll.u32 (%p92_p4), %s736_s19, 3  ;;  %s571_s5 = sshll.u32 (%p92_p4), %s183_s29, 5 }
  0x15   : > { %s188_s8 = scalar_lea.vmem (%p92_p4), %s899_s2, %s589_s30  ;;  %s185_s9 = scalar_lea.vmem (%p92_p4), [#allocation2], %s571_s5 }
  0x16   : > { %v223_v0 = vld [vmem:[%s188_s8] sm:$0xff] (%p92_p4)  ;;  %v225_v1 = vld [vmem:[%s188_s8 + $0x10] sm:$0xff] (%p92_p4) }
  0x17   : > { %v227_v2 = vld [vmem:[%s188_s8 + $0x20] sm:$0xff] (%p92_p4)  ;;  %224 = vst [vmem:[%s185_s9] sm:$0xff] (%p92_p4), %v223_v0  ;;  %226 = vst [vmem:[%s185_s9 + $0x8] sm:$0xff] (%p92_p4), %v225_v1  ;;  %v229_v3 = vld [vmem:[%s188_s8 + $0x30] sm:$0xff] (%p92_p4) }
  0x18   : > { %228 = vst [vmem:[%s185_s9 + $0x10] sm:$0xff] %v227_v2  ;;  %230 = vst [vmem:[%s185_s9 + $0x18] sm:$0xff] %v229_v3 }
  0x19 PF: > { %p574_p11 = scmp.ge.s32.totalorder %s740_s20, 1  ;;  %p235_p12 = scmp.lt.s32.totalorder %s740_s20, 3 }
  0x1b   : > { %p236_p13 = pnand %p574_p11, %p235_p12 }
  0x1c   : > { %s835_s10 = sand.u32 (!%p236_p13), 1, %s724_s16   ;;  %s590_s8 = sshll.u32 (!%p236_p13), %s732_s18, 8 }
  0x1d   : > { %239 = sbr.rel (%p236_p13) target bundleno = 473 (0x1d9), region = 70  ;;  %s575_s11 = sshll.u32 (!%p236_p13), %s835_s10, 5 }
  0x1e   : > { %s244_s22 = scalar_lea.vmem (!%p236_p13), [#allocation2], %s575_s11  ;;  %s576_s5 = sshll.u32 (!%p236_p13), %s835_s10, 4 }
  0x1f   : > { %s270_s6 = scalar_lea.vmem (!%p236_p13), [#allocation3], %s576_s5  ;;  %s473_s12 = scalar_lea.hbm (!%p236_p13), %s901_s4, %s590_s8 }
  0x20   : > { %s475_s7 = sshll.u32 (!%p236_p13), %s270_s6, 4  ;;  %s459_s13 = scalar_lea.sflag (!%p236_p13), [#allocation4], %s835_s10  ;;  %s852_s7 = int_to_ptr.vmem [resolvable:$true] %s475_s7 }
  0x21   : > { %s664_s14 = scalar_lea.vmem (!%p236_p13), %s852_s7, 256  ;;  %s744_s18 = smov (!%p236_p13), [#allocation3]  }
  0x22   : > { %v742_v4 = vmov 0   ;;  %v357_v5 = vld [vmem:[%s900_s3 + $0x8] sm:$0xff]  ;;  %v356_v6 = vld [vmem:[%s900_s3] sm:$0xff]  ;;  %v649_v7 = vld [vmem:[%s244_s22 + $0x14] ss:$8 sps:$4 sm:$0xff]   ;;  %vm309_vm0 = vcmask 261120   ;;  %p665_p0 = scmp.ne.s32.totalorder %s852_s7, %s664_s14 }
  0x23   : > { %345 = vmatprep.mubr.bf16.mxu0 %v742_v4  ;;  %648 = vset.pattern.permute.xlu0 %v742_v4  ;;  %v651_v8 = vld [vmem:[%s244_s22 + $0x10] ss:$8 sps:$4 sm:$0xff]   ;;  %v652_v9 = vld [vmem:[%s244_s22 + $0x4] ss:$8 sps:$4 sm:$0xff]   ;;  %v654_v10 = vld [vmem:[%s244_s22] ss:$8 sps:$4 sm:$0xff]  }
  0x24   : > { %365 = vperm.xlu0 %648, %v357_v5   ;;  %325 = vmatprep.subr.bf16.mxu0 %v649_v7  ;;  %v655_v11 = vld [vmem:[%s898_s1] sm:$0xff]   ;;  %v743_v12 = vmov 0.0   ;;  %vm381_vm1 = vcmask 130048   ;;  %p666_p1 = pnand %p665_p0, %p809_p5  ;;  %s668_s21 = sshll.u32 %s744_s18, 4  ;;  %s669_s21 = int_to_ptr.vmem [resolvable:$false] %s668_s21 }
  0x25   : > { %326 = vmatpush1.bf16.msra.mxu0 %v651_v8  ;;  %449 = vmatprep.mubr.f32.mxu1 %v743_v12  ;;  %v380_v30 = vld [vmem:[%s897_s0] sm:$0xff]  ;;  %s670_s22 = scalar_lea.vmem %s669_s21, 512  ;;  %p671_p3 = scmp.lt.s32.totalorder %s852_s7, %s669_s21 }
  0x26   : > { %327 = vmatprep.subr.bf16.mxu0 %v652_v9  ;;  %p667_p2 = pneg %p666_p1  ;;  %p672_p4 = scmp.lt.s32.totalorder %s670_s22, %s664_s14 }
  0x28   : > { %360 = vperm.xlu0 %648, %v356_v6   ;;  %p673_p6 = por %p672_p4, %p671_p3 }
  0x29   : > { %328 = vmatpush1.bf16.msra.mxu0 %v654_v10 }
  0x2a   : > { %p674_p7 = pnand %p673_p6, %p667_p2 }
  0x2c   : > { %582 = vmatmul.mubr.msk.bf16.vlgmr.msra.gmra.mxu0 %vm309_vm0, %v655_v11 }
  0x9f   : > { %v366_v13 = vpop.permute.xlu0 %365 }
  0xa3   : > { %v361_v16 = vpop.permute.xlu0 %360 }
  0xec   : > { %v347_v14 = vpop.f32.mrf.mxu0 }
  0xed   : > { %v368_v20 = vsub.f32 %v347_v14, %v361_v16 }
  0xee   : > { %v349_v15 = vpop.f32.mrf.mxu0 }
  0xef   : > { %v369_v18 = vsub.f32 %v349_v15, %v361_v16  ;;  %v372_v26 = vmul.f32 1.442695, %v368_v20 }
  0xf0   : > { %v351_v17 = vpop.f32.mrf.mxu0 }
  0xf1   : > { %v370_v19 = vsub.f32 %v351_v17, %v366_v13  ;;  %v374_v24 = vmul.f32 1.442695, %v369_v18 }
  0xf2   : > { %v353_v21 = vpop.f32.mrf.mxu0 }
  0xf3   : > { %v371_v22 = vsub.f32 %v353_v21, %v366_v13  ;;  %v376_v23 = vmul.f32 1.442695, %v370_v19 }
  0xf5   : > { %v378_v25 = vmul.f32 1.442695, %v371_v22 }
  0xf7   : > { %656 = vpow2.f32 %v378_v25 }
  0xf8   : > { %658 = vpow2.f32 %v376_v23 }
  0xf9   : > { %660 = vpow2.f32 %v374_v24 }
  0xfa   : > { %662 = vpow2.f32 %v372_v26 }
 0x104   : > { %v657_v27 = vpop.eup %656 }
 0x105   : > { %v659_v28 = vpop.eup %658  ;;  %413 = vmatprep.subr.mxu1 %v657_v27 }
 0x106   : > { %v661_v29 = vpop.eup %660  ;;  %414 = vmatpush1.msra.mxu1 %v659_v28 }
 0x107   : > { %v663_v31 = vpop.eup %662  ;;  %415 = vmatprep.subr.mxu1 %v661_v29 }
 0x108   : > { %416 = vmatpush1.msra.mxu1 %v663_v31 }
 0x109   : > { %583 = vmatmul.mubr.msk.f32.vlgmr.msra.gmra.mxu1 %vm381_vm1, %v380_v30 }
 0x1c9   : > { %v451_v32 = vpop.f32.mrf.mxu1 }
 0x1ca   : > { %456 = vst [vmem:[%s270_s6] sm:$0xff] %v451_v32 }
 0x1cb   : > { %v453_v33 = vpop.f32.mrf.mxu1 }
 0x1cc   : > { %457 = vst [vmem:[%s270_s6 + $0x8] sm:$0xff] %v453_v33 }
 0x1cd   : > { %677 = shalt.err (!%p674_p7)
}
 0x1ce   : > { %s678_s24 = scalar_lea.hbm %s473_s12, 256  ;;  %s682_s29 = scalar_lea.hbm %s901_s4, 512 }
 0x1cf   : > { %p679_p8 = scmp.ne.s32.totalorder %s473_s12, %s678_s24  ;;  %p683_p13 = scmp.lt.s32.totalorder %s473_s12, %s901_s4 }
 0x1d0   : > { %p684_p0 = scmp.lt.s32.totalorder %s682_s29, %s678_s24 }
 0x1d1   : > { %p680_p11 = pnand %p679_p8, %p809_p5 }
 0x1d2   : > { %p685_p1 = por %p684_p0, %p683_p13 }
 0x1d3   : > { %p681_p12 = pneg %p680_p11 }
 0x1d5   : > { %p686_p10 = pnand %p685_p1, %p681_p12 }
 0x1d7   : > { %689 = shalt.err (!%p686_p10)
}
 0x1d8   : > { %591 = dma.vmem_to_hbm [thread:$0]  (%p809_p5), %s852_s7, 256, %s473_s12, %s459_s13  }
 0x1d9 PF: > { %s487_s6 = sand.u32 1, %s720_s15   ;;  %p905_p2 = scmp.ge.s32.totalorder %s740_s20, 2 }
 0x1da   : > { %s488_s8 = scalar_lea.sflag [#allocation4], %s487_s6 }
 0x1db   : > { %p594_p3 = pnand %p905_p2, %p820_p9 }
 0x1dd   : > { %p595_p4 = pneg %p594_p3 }
 0x1df   : > { %715 = dma.done.wait (%p595_p4), %s488_s8, 256  }
 0x1e0   : > { %717 = vsyncadd (%p595_p4), %s488_s8, 4294967040  ;;  %s17_s20 = sadd.s32 1, %s740_s20   ;;  %s906_s15 = smov %s724_s16 }
 0x1e1   : > { %p14_p6 = scmp.ge.s32.totalorder %s17_s20, 4   ;;  %s907_s16 = smov %s728_s17 }
 0x1e2   : > { %s908_s17 = smov %s818_s27  ;;  %s909_s18 = smov %s736_s19 }
 0x1e3   : > { %s910_s19 = smov %s912_s23  ;;  %16 = sbr.rel (!%p14_p6) target bundleno = 4 (0x4), region = 117 }
 0x1e8   :  { %493 = vsyncpa [#allocation4], 1 }
 0x1e9   :  { %495 = vsyncpa [#allocation4 + $0x1], 1 }

// kernel: fwd.2
= control target key start
LH: loop header
LB: loop body
LE: loop exit
PB: predicated region body
PF: predicated region fallthrough
CT: control target
= control target key end

     0   :  { %s3519_s0 = inlined_call_operand.hbm [shape: f32[16,16], index: 0, kind: input, shape index: {}]   ;;  %s3520_s1 = inlined_call_operand.hbm [shape: f32[16,16], index: 1, kind: input, shape index: {}]   ;;  %s3521_s2 = inlined_call_operand.hbm [shape: f32[16,16], index: 2, kind: input, shape index: {}]   ;;  %s3522_s3 = inlined_call_operand.hbm [shape: f32[16,16], index: 3, kind: input, shape index: {}]   ;;  %s3523_s4 = inlined_call_operand.hbm [shape: f32[16,16], index: 4, kind: input, shape index: {}]   ;;  %s3524_s5 = inlined_call_operand.hbm [shape: f32[16,16], index: 5, kind: input, shape index: {}]   ;;  %s3525_s6 = inlined_call_operand.hbm [shape: f32[16,16], index: 6, kind: input, shape index: {}]   ;;  %s3526_s7 = inlined_call_operand.hbm [shape: f32[16,16], index: 7, kind: input, shape index: {}]   ;;  %s3527_s8 = inlined_call_operand.vmem [shape: bf16[16,32], index: 8, kind: input, shape index: {}]   ;;  %s3528_s9 = inlined_call_operand.hbm [shape: bf16[32,512], index: 9, kind: input, shape index: {}]   ;;  %s3529_s10 = inlined_call_operand.vmem [shape: f32[2,16,1], index: 10, kind: output, shape index: {0}]   ;;  %s3530_s11 = inlined_call_operand.vmem [shape: f32[2,16,1], index: 11, kind: output, shape index: {1}]   ;;  %s3531_s12 = inlined_call_operand.vmem [shape: f32[2,16,16], index: 12, kind: output, shape index: {2}]  }
   0x1   :  { %3535 = sst [smem:[#allocation22_spill]] %s3519_s0 }
   0x2   :  { %3536 = sst [smem:[#allocation23_spill]] %s3520_s1 }
   0x3   :  { %3537 = sst [smem:[#allocation24_spill]] %s3521_s2 }
   0x4   :  { %3538 = sst [smem:[#allocation25_spill]] %s3522_s3 }
   0x5   :  { %3539 = sst [smem:[#allocation26_spill]] %s3530_s11 }
   0x6   :  { %3540 = sst [smem:[#allocation27_spill]] %s3531_s12 }
   0x7   :  { %18 = vsyncpa [#allocation3], 0 }
   0x8   :  { %19 = vsyncpa [#allocation5], 0 }
   0x9   :  { %20 = vsyncpa [#allocation8], 0 }
   0xa   :  { %21 = vsyncpa [#allocation11], 0 }
   0xb   :  { %22 = vsyncpa [#allocation14], 0  ;;  %s3053_s21 = smov 0   ;;  %s3055_s22 = smov 0  }
   0xc   :  { %s3057_s23 = smov 0   ;;  %s3059_s24 = smov 0  }
   0xd   :  { %s3061_s25 = smov 0   ;;  %s3063_s26 = smov 0  }
   0xe LB: > { %s3532_s27 = sadd.s32 4294967295, %s2969_s26   ;;  %p2188_p0 = scmp.ge.s32.totalorder %s2969_s26, 1  ;;  %s2969_s26 = sphi %s3063_s26, %s28_s26   ;;  %s2965_s25 = sphi %s3061_s25, %s3561_s25   ;;  %s2961_s24 = sphi %s3059_s24, %s3560_s24   ;;  %s2957_s23 = sphi %s3057_s23, %s3559_s23   ;;  %s2953_s22 = sphi %s3055_s22, %s3558_s22   ;;  %s2949_s21 = sphi %s3053_s21, %s3557_s21  }
   0xf   : > { %p3087_p1 = scmp.eq.s32.totalorder %s3532_s27, 0  ;;  %p340_p2 = scmp.lt.s32.totalorder %s2969_s26, 3 }
  0x10   : > { %s2971_s30 = smov [#allocation2]   ;;  %s2972_s15 = smov [#allocation4]  }
  0x11   : > { %p3092_p3 = pnand %p2188_p0, %p340_p2  ;;  %s352_s13 = sshll.u32 %s2971_s30, 4  ;;  %s353_s13 = int_to_ptr.vmem [resolvable:$true] %s352_s13 }
  0x12   : > { %s365_s16 = sshll.u32 %s2972_s15, 4  ;;  %s2973_s17 = smov [#allocation7]   ;;  %s366_s16 = int_to_ptr.vmem [resolvable:$true] %s365_s16 }
  0x13   : > { %p2374_p4 = pneg %p3092_p3  ;;  %s391_s18 = sshll.u32 %s2973_s17, 4  ;;  %s392_s18 = int_to_ptr.vmem [resolvable:$true] %s391_s18 }
  0x14   : > { %s2674_s20 = scalar_lea.vmem %s353_s13, 256  ;;  %p2682_p10 = scmp.lt.s32.totalorder %s353_s13, %s353_s13 }
  0x15   : > { %p3100_p5 = pnand %p2374_p4, %p3087_p1  ;;  %p2675_p7 = scmp.ne.s32.totalorder %s353_s13, %s2674_s20 }
  0x16   : > { %p2683_p11 = scmp.lt.s32.totalorder %s2674_s20, %s2674_s20 }
  0x17   : > { %p3106_p6 = pneg %p3100_p5 }
  0x18   : > { %p2684_p12 = por %p2683_p11, %p2682_p10 }
  0x19   : > { %p2677_p8 = pnand %p2675_p7, %p3106_p6 }
  0x1b   : > { %p2678_p9 = pneg %p2677_p8 }
  0x1d   : > { %p2685_p13 = pnand %p2684_p12, %p2678_p9 }
  0x1f   : > { %2688 = shalt.err (!%p2685_p13)
}
  0x20   : > { %s3533_s30 = smov 128   ;;  %s3534_s15 = smov 8  }
  0x21   : > { %s3545_s0 = sld [smem:[#allocation22_spill]]  ;;  %s2700_s12 = scalar_lea.vmem %s366_s16, 256 }
  0x22   : > { %p2701_p0 = scmp.ne.s32.totalorder %s366_s16, %s2700_s12  ;;  %p2708_p7 = scmp.lt.s32.totalorder %s366_s16, %s366_s16 }
  0x23   : > { %p2709_p8 = scmp.lt.s32.totalorder %s2700_s12, %s2700_s12 }
  0x24   : > { %p2703_p2 = pnand %p2701_p0, %p3106_p6 }
  0x25   : > { %p2710_p9 = por %p2709_p8, %p2708_p7 }
  0x26   : > { %p2704_p4 = pneg %p2703_p2 }
  0x27   : > { %2377 = dma.hbm_to_vmem [thread:$0]  (!%p3100_p5), %s3545_s0, 256, %s353_s13, [#allocation3], %s3533_s30, %s3533_s30, %s3534_s15  }
  0x28   : > { %p2711_p10 = pnand %p2710_p9, %p2704_p4 }
  0x2a   : > { %2714 = shalt.err (!%p2711_p10)
}
  0x2b   : > { %s3546_s1 = sld [smem:[#allocation23_spill]]  ;;  %s2726_s27 = scalar_lea.vmem %s392_s18, 256 }
  0x2c   : > { %p2727_p11 = scmp.ne.s32.totalorder %s392_s18, %s2726_s27  ;;  %p2734_p0 = scmp.lt.s32.totalorder %s392_s18, %s392_s18 }
  0x2d   : > { %p2735_p2 = scmp.lt.s32.totalorder %s2726_s27, %s2726_s27 }
  0x2e   : > { %p2729_p12 = pnand %p2727_p11, %p3106_p6 }
  0x2f   : > { %p2736_p4 = por %p2735_p2, %p2734_p0 }
  0x30   : > { %p2730_p13 = pneg %p2729_p12 }
  0x31   : > { %2380 = dma.hbm_to_vmem [thread:$0]  (!%p3100_p5), %s3546_s1, 256, %s366_s16, [#allocation5], %s3533_s30, %s3533_s30, %s3534_s15  }
  0x32   : > { %p2737_p7 = pnand %p2736_p4, %p2730_p13 }
  0x34   : > { %2740 = shalt.err (!%p2737_p7)
}
  0x35   : > { %s3547_s3 = sld [smem:[#allocation25_spill]]  ;;  %s2976_s13 = smov [#allocation10]  }
  0x36   : > { %s417_s16 = sshll.u32 %s2976_s13, 4  ;;  %s2977_s17 = smov [#allocation6]   ;;  %s418_s16 = int_to_ptr.vmem [resolvable:$true] %s417_s16 }
  0x37   : > { %s378_s20 = sshll.u32 %s2977_s17, 4  ;;  %s2752_s0 = scalar_lea.vmem %s418_s16, 256  ;;  %s379_s20 = int_to_ptr.vmem [resolvable:$true] %s378_s20 }
  0x38   : > { %p2753_p8 = scmp.ne.s32.totalorder %s418_s16, %s2752_s0  ;;  %p2760_p11 = scmp.lt.s32.totalorder %s418_s16, %s418_s16 }
  0x39   : > { %p2761_p12 = scmp.lt.s32.totalorder %s2752_s0, %s2752_s0 }
  0x3a   : > { %p2755_p9 = pnand %p2753_p8, %p3106_p6 }
  0x3b   : > { %2386 = dma.hbm_to_vmem [thread:$0]  (!%p3100_p5), %s3547_s3, 256, %s392_s18, [#allocation8], %s3533_s30, %s3533_s30, %s3534_s15  }
  0x3c   : > { %p2756_p10 = pneg %p2755_p9  ;;  %p2762_p13 = por %p2761_p12, %p2760_p11 }
  0x3e   : > { %p2763_p0 = pnand %p2762_p13, %p2756_p10 }
  0x40   : > { %2766 = shalt.err (!%p2763_p0)
}
  0x41   : > { %2392 = dma.hbm_to_vmem [thread:$0]  (!%p3100_p5), %s3524_s5, 256, %s418_s16, [#allocation11], %s3533_s30, %s3533_s30, %s3534_s15  }
  0x42   : > { %s2778_s12 = scalar_lea.vmem %s379_s20, 256  ;;  %p2786_p8 = scmp.lt.s32.totalorder %s379_s20, %s379_s20 }
  0x43   : > { %p2779_p2 = scmp.ne.s32.totalorder %s379_s20, %s2778_s12  ;;  %p2787_p9 = scmp.lt.s32.totalorder %s2778_s12, %s2778_s12 }
  0x45   : > { %p2781_p4 = pnand %p2779_p2, %p3106_p6  ;;  %p2788_p10 = por %p2787_p9, %p2786_p8 }
  0x47   : > { %p2782_p7 = pneg %p2781_p4 }
  0x49   : > { %p2789_p11 = pnand %p2788_p10, %p2782_p7 }
  0x4b   : > { %2792 = shalt.err (!%p2789_p11)
}
  0x4c   : > { %s3548_s2 = sld [smem:[#allocation24_spill]]  ;;  %s2978_s13 = smov [#allocation9]  }
  0x4d   : > { %s404_s16 = sshll.u32 %s2978_s13, 4  ;;  %s2979_s17 = smov [#allocation12]   ;;  %s405_s16 = int_to_ptr.vmem [resolvable:$true] %s404_s16 }
  0x4e   : > { %s430_s18 = sshll.u32 %s2979_s17, 4  ;;  %s2804_s27 = scalar_lea.vmem %s405_s16, 256  ;;  %s431_s18 = int_to_ptr.vmem [resolvable:$true] %s430_s18 }
  0x4f   : > { %p2805_p12 = scmp.ne.s32.totalorder %s405_s16, %s2804_s27  ;;  %p2812_p2 = scmp.lt.s32.totalorder %s405_s16, %s405_s16 }
  0x50   : > { %p2813_p4 = scmp.lt.s32.totalorder %s2804_s27, %s2804_s27 }
  0x51   : > { %p2807_p13 = pnand %p2805_p12, %p3106_p6 }
  0x52   : > { %2383 = dma.hbm_to_vmem [thread:$0]  (!%p3100_p5), %s3548_s2, 256, %s379_s20, [#allocation5], %s3533_s30, %s3533_s30, %s3534_s15  }
  0x53   : > { %p2808_p0 = pneg %p2807_p13  ;;  %p2814_p7 = por %p2813_p4, %p2812_p2 }
  0x55   : > { %p2815_p8 = pnand %p2814_p7, %p2808_p0 }
  0x57   : > { %2818 = shalt.err (!%p2815_p8)
}
  0x58   : > { %2389 = dma.hbm_to_vmem [thread:$0]  (!%p3100_p5), %s3523_s4, 256, %s405_s16, [#allocation8], %s3533_s30, %s3533_s30, %s3534_s15  }
  0x59   : > { %s2830_s0 = scalar_lea.vmem %s431_s18, 256  ;;  %p2838_p12 = scmp.lt.s32.totalorder %s431_s18, %s431_s18 }
  0x5a   : > { %p2831_p9 = scmp.ne.s32.totalorder %s431_s18, %s2830_s0  ;;  %p2839_p13 = scmp.lt.s32.totalorder %s2830_s0, %s2830_s0 }
  0x5c   : > { %p2833_p10 = pnand %p2831_p9, %p3106_p6  ;;  %p2840_p0 = por %p2839_p13, %p2838_p12 }
  0x5e   : > { %p2834_p11 = pneg %p2833_p10 }
  0x60   : > { %p2841_p2 = pnand %p2840_p0, %p2834_p11 }
  0x62   : > { %2844 = shalt.err (!%p2841_p2)
}
  0x63   : > { %2395 = dma.hbm_to_vmem [thread:$0]  (!%p3100_p5), %s3525_s6, 256, %s431_s18, [#allocation11], %s3533_s30, %s3533_s30, %s3534_s15  }
  0x64   : > { %s2980_s16 = smov [#allocation13]  }
  0x65   : > { %s443_s17 = sshll.u32 %s2980_s16, 4  ;;  %s444_s17 = int_to_ptr.vmem [resolvable:$true] %s443_s17 }
  0x66   : > { %s2856_s27 = scalar_lea.vmem %s444_s17, 256  ;;  %p2864_p9 = scmp.lt.s32.totalorder %s444_s17, %s444_s17 }
  0x67   : > { %p2857_p4 = scmp.ne.s32.totalorder %s444_s17, %s2856_s27  ;;  %p2865_p10 = scmp.lt.s32.totalorder %s2856_s27, %s2856_s27 }
  0x69   : > { %p2859_p7 = pnand %p2857_p4, %p3106_p6  ;;  %p2866_p11 = por %p2865_p10, %p2864_p9 }
  0x6b   : > { %p2860_p8 = pneg %p2859_p7 }
  0x6d   : > { %p2867_p12 = pnand %p2866_p11, %p2860_p8 }
  0x6f   : > { %2870 = shalt.err (!%p2867_p12)
}
  0x70   : > { %2398 = dma.hbm_to_vmem [thread:$0]  (!%p3100_p5), %s3526_s7, 256, %s444_s17, [#allocation14], %s3533_s30, %s3533_s30, %s3534_s15  }
  0x71   : > { %s40_s14 = sadd.s32 1, %s2965_s25  ;;  %s238_s19 = sadd.s32 1, %s2957_s23 }
  0x72   : > { %p42_p6 = scmp.ge.s32.totalorder %s40_s14, 2  ;;  %p245_p13 = scmp.ne.s32.totalorder %s2957_s23, %s2953_s22 }
  0x73   : > { %p246_p0 = scmp.eq.s32.totalorder %s2969_s26, 0  ;;  %p251_p2 = scmp.ne.s32.totalorder %s2953_s22, %s2949_s21 }
  0x74   : > { %s3563_s14 = smov (%p42_p6, %s40_s14), 0  ;;  %p2411_p5 = scmp.lt.s32.totalorder %s2969_s26, 2 }
  0x75   : > { %p3199_p4 = por %p246_p0, %p245_p13  ;;  %p3205_p7 = por %p3087_p1, %p251_p2 }
  0x76   : > { %s235_s11 = ssub.s32 %s2965_s25, %s3563_s14  ;;  %s460_s13 = sand.u32 1, %s2969_s26  }
  0x77   : > { %p236_p8 = scmp.eq.s32.totalorder %s235_s11, 0  ;;  %s462_s16 = sand.u32 1, %s2957_s23  }
  0x78   : > { %s2198_s21 = sshll.u32 %s462_s16, 5  ;;  %s2248_s27 = sshll.u32 %s2965_s25, 7 }
  0x79   : > { %s3215_s17 = scalar_select %p236_p8, %s2957_s23, %s238_s19  }
  0x7a   : > { %s471_s30 = scalar_lea.hbm %s3528_s9, %s2248_s27  ;;  %s464_s15 = scalar_lea.vmem [#allocation15], %s2198_s21 }
  0x7b   : > { %s472_s1 = sshll.u32 %s464_s15, 4  ;;  %p3223_p9 = pnand %p2411_p5, %p3199_p4  ;;  %s473_s1 = int_to_ptr.vmem [resolvable:$true] %s472_s1 }
  0x7c   : > { %s461_s11 = scalar_lea.sflag [#allocation3], %s460_s13  ;;  %s2884_s19 = scalar_lea.vmem %s473_s1, 512 }
  0x7d   : > { %p2873_p10 = pneg %p3223_p9  ;;  %p2885_p11 = scmp.ne.s32.totalorder %s473_s1, %s2884_s19 }
  0x7e   : > { %s2981_s16 = smov [#allocation15]  }
  0x7f   : > { %p2887_p12 = pnand %p2885_p11, %p2873_p10  ;;  %s2889_s3 = sshll.u32 %s2981_s16, 4  ;;  %s2890_s3 = int_to_ptr.vmem [resolvable:$false] %s2889_s3 }
  0x80   : > { %s2891_s27 = scalar_lea.vmem %s2890_s3, 1024  ;;  %p2892_p13 = scmp.lt.s32.totalorder %s473_s1, %s2890_s3 }
  0x81   : > { %p2888_p6 = pneg %p2887_p12  ;;  %p2893_p0 = scmp.lt.s32.totalorder %s2891_s27, %s2884_s19 }
  0x83   : > { %p2894_p2 = por %p2893_p0, %p2892_p13 }
  0x85   : > { %p2895_p4 = pnand %p2894_p2, %p2888_p6 }
  0x87   : > { %2898 = shalt.err (!%p2895_p4)
}
  0x88   : > { %s2982_s15 = smov 256   ;;  %s3552_s12 = smov 8  }
  0x89   : > { %s3553_s13 = smov 128   ;;  %484 = sbr.rel (%p3092_p3) target bundleno = 3537 (0xdd1), region = 60 }
  0x8a   : > { %2402 = dma.hbm_to_vmem [thread:$0]  (!%p3223_p9), %s471_s30, 512, %s473_s1, %s461_s11, %s2982_s15, %s3553_s13, %s3552_s12  }
  0x8e   : > { %2924 = dma.done.wait (%p3087_p1), [#allocation3], 256  }
  0x8f   : > { %2926 = vsyncadd (%p3087_p1), [#allocation3], 4294967040 }
  0x90   : > { %2928 = dma.done.wait (%p3087_p1), [#allocation5], 512  }
  0x91   : > { %2930 = vsyncadd (%p3087_p1), [#allocation5], 4294966784 }
  0x92   : > { %2932 = dma.done.wait (%p3087_p1), [#allocation8], 512  }
  0x93   : > { %2934 = vsyncadd (%p3087_p1), [#allocation8], 4294966784 }
  0x94   : > { %2936 = dma.done.wait (%p3087_p1), [#allocation11], 512  }
  0x95   : > { %2938 = vsyncadd (%p3087_p1), [#allocation11], 4294966784 }
  0x96   : > { %2940 = dma.done.wait (%p3087_p1), [#allocation14], 256  }
  0x97   : > { %2942 = vsyncadd (%p3087_p1), [#allocation14], 4294967040  ;;  %s3554_s1 = sadd.s32 4294967295, %s2969_s26   ;;  %s520_s3 = sand.u32 1, %s2953_s22  }
  0x98   : > { %s518_s2 = sand.u32 1, %s3554_s1   ;;  %s2210_s29 = sshll.u32 %s520_s3, 5 }
  0x99   : > { %s519_s30 = scalar_lea.sflag [#allocation3], %s518_s2  ;;  %s3258_s21 = scalar_lea.vmem [#allocation15], %s2210_s29 }
  0x9a   : > { %2944 = dma.done.wait (%p3205_p7), %s519_s30, 512  }
  0x9b   : > { %2946 = vsyncadd (%p3205_p7), %s519_s30, 4294966784  ;;  %vm608_vm0 = vcmask 130048   ;;  %v603_v0 = vld [vmem:[#allocation6 + $0x8] sm:$0xff]  ;;  %v602_v1 = vld [vmem:[#allocation6] sm:$0xff]  ;;  %p575_p1 = scmp.lt.s32.totalorder %s2961_s24, 1  ;;  %s3555_s12 = sld [smem:[#allocation26_spill]] }
  0x9c   : > { %v600_v2 = vld [vmem:[#allocation2] sm:$0xff]  ;;  %2284 = vmatprep.subr.mxu0 %v603_v0  ;;  %v601_v3 = vld [vmem:[#allocation2 + $0x8] sm:$0xff]  ;;  %v605_v10 = vld [vmem:[#allocation7 + $0x8] sm:$0xff]  ;;  %s2243_s1 = sshll.u32 %s2961_s24, 8  ;;  %s3556_s30 = sld [smem:[#allocation27_spill]] }
  0x9d   : > { %2288 = vmatprep.mubr.msk.f32.mxu0 %vm608_vm0, %v600_v2  ;;  %2285 = vmatpush3.msra.mxu0 %v603_v0  ;;  %v604_v11 = vld [vmem:[#allocation7] sm:$0xff]  ;;  %v607_v38 = vld [vmem:[#allocation9 + $0x8] sm:$0xff]  ;;  %v606_v39 = vld [vmem:[#allocation9] sm:$0xff]  ;;  %s576_s20 = scalar_select %p575_p1, %s2961_s24, 1 }
  0x9e   : > { %2295 = vmatprep.mubr.msk.f32.mxu1 %vm608_vm0, %v600_v2  ;;  %2286 = vmatprep.subr.mxu0 %v602_v1  ;;  %v1168_v40 = vld [vmem:[#allocation10 + $0x8] sm:$0xff]  ;;  %s3455_s2 = sadd.s32 256, %s2243_s1 }
  0x9f   : > { %2287 = vmatpush3.msra.mxu0 %v602_v1  ;;  %2291 = vmatprep.subr.mxu1 %v605_v10  ;;  %s3422_s18 = sshll.u32 %s576_s20, 4  ;;  %p2244_p3 = scmp.le.s32.totalorder %s3455_s2, 500 }
  0xa0   : > { %2289 = vmatmul.mubr.msk.f32.vlgmr.msra.gmra.mxu0 %vm608_vm0, %v601_v3  ;;  %2292 = vmatpush3.msra.mxu1 %v605_v10  ;;  %s3428_s16 = scalar_lea.vmem %s3529_s10, %s3422_s18 }
  0xa1   : > { %2293 = vmatprep.subr.mxu1 %v604_v11  ;;  %2298 = vmatprep.subr.mxu0 %v607_v38  ;;  %s3434_s13 = scalar_lea.vmem %s3555_s12, %s3422_s18 }
  0xa2   : > { %2294 = vmatpush3.msra.mxu1 %v604_v11  ;;  %2299 = vmatpush3.msra.mxu0 %v607_v38 }
  0xa3   : > { %2296 = vmatmul.mubr.msk.f32.vlgmr.msra.gmra.mxu1 %vm608_vm0, %v601_v3  ;;  %2300 = vmatprep.subr.mxu0 %v606_v39 }
  0xa4   : > { %2301 = vmatpush3.msra.mxu0 %v606_v39 }
  0xa5   : > { %2312 = vmatprep.subr.mxu0 %v1168_v40 }
 0x160   : > { %v2290_v4 = vpop.f32.mrf.mxu0 }
 0x161   : > { %v766_v7 = vmul.f32 %v2290_v4, %v2290_v4 }
 0x162   : > { %v681_v5 = vpop.f32.mrf.mxu0 }
 0x163   : > { %v765_v6 = vmul.f32 %v681_v5, %v681_v5  ;;  %v770_v9 = vsel %vm608_vm0, %v766_v7, 0.0  ;;  %v3272_v41 = vpop.f32.mrf.mxu1  ;;  %v1166_v7 = vld [vmem:[#allocation4 + $0x8] sm:$0xff] }
 0x164   : > { %v836_v42 = vmul.f32 %v3272_v41, %v3272_v41 }
 0x165   : > { %v767_v8 = vsel %vm608_vm0, %v765_v6, 0.0  ;;  %v3276_v43 = vpop.f32.mrf.mxu1  ;;  %v1167_v6 = vld [vmem:[#allocation10] sm:$0xff] }
 0x166   : > { %768 = vadd.xlane.f32.xlu0 %v767_v8  ;;  %v835_v44 = vmul.f32 %v3276_v43, %v3276_v43  ;;  %v840_v45 = vsel %vm608_vm0, %v836_v42, 0.0  ;;  %v1170_v8 = vld [vmem:[#allocation12 + $0x8] sm:$0xff] }
 0x168   : > { %v837_v46 = vsel %vm608_vm0, %v835_v44, 0.0 }
 0x16a   : > { %771 = vadd.xlane.f32.xlu0 %v770_v9  ;;  %v1169_v9 = vld [vmem:[#allocation12] sm:$0xff] }
 0x16e   : > { %841 = vadd.xlane.f32.xlu0 %v840_v45 }
 0x1ef   : > { %v769_v12 = vpop.xlane.xlu0 %768 }
 0x1f0   : > { %2491 = vrsqrt.f32 %v769_v12  ;;  %vm775_vm1 = vcmp.eq.f32.partialorder %v769_v12, inf  ;;  %v778_v16 = vand.u32 2147483648, %v769_v12  ;;  %vm777_vm2 = vcmp.eq.f32.partialorder %v769_v12, 0.0 }
 0x1f3   : > { %v772_v13 = vpop.xlane.xlu0 %771 }
 0x1f4   : > { %2493 = vrsqrt.f32 %v772_v13  ;;  %vm782_vm3 = vcmp.eq.f32.partialorder %v772_v13, inf  ;;  %v785_v22 = vand.u32 2147483648, %v772_v13  ;;  %vm784_vm4 = vcmp.eq.f32.partialorder %v772_v13, 0.0 }
 0x1f7   : > { %v842_v11 = vpop.xlane.xlu0 %841 }
 0x1f8   : > { %vm852_vm12 = vcmp.eq.f32.partialorder %v842_v11, inf  ;;  %vm854_vm14 = vcmp.eq.f32.partialorder %v842_v11, 0.0 }
 0x1fd   : > { %v2492_v14 = vpop.eup %2491 }
 0x1fe   : > { %v774_v15 = vmul.f32 %v2492_v14, %v769_v12 }
 0x200   : > { %v776_v17 = vsel %vm775_vm1, %v769_v12, %v774_v15 }
 0x201   : > { %v2494_v18 = vpop.eup %2493  ;;  %v779_v19 = vsel %vm777_vm2, %v778_v16, %v776_v17 }
 0x202   : > { %v787_v20 = vmax.f32 %v779_v19, 1e-15  ;;  %v781_v21 = vmul.f32 %v2494_v18, %v772_v13  ;;  %v855_v18 = vand.u32 2147483648, %v842_v11 }
 0x204   : > { %2495 = vtanh.f32 %v787_v20  ;;  %v783_v23 = vsel %vm782_vm3, %v772_v13, %v781_v21 }
 0x205   : > { %v786_v24 = vsel %vm784_vm4, %v785_v22, %v783_v23  ;;  %2497 = vrcp.f32 %v787_v20 }
 0x206   : > { %v788_v25 = vmax.f32 %v786_v24, 1e-15 }
 0x208   : > { %2499 = vtanh.f32 %v788_v25 }
 0x209   : > { %2501 = vrcp.f32 %v788_v25 }
 0x211   : > { %v2496_v26 = vpop.eup %2495 }
 0x212   : > { %v791_v27 = vmul.f32 %v2496_v26, %v681_v5  ;;  %v2498_v28 = vpop.eup %2497 }
 0x214   : > { %v794_v29 = vmul.f32 %v2498_v28, %v791_v27 }
 0x215   : > { %v2500_v30 = vpop.eup %2499 }
 0x216   : > { %v797_v31 = vmul.f32 %v794_v29, %v794_v29  ;;  %v792_v32 = vmul.f32 %v2500_v30, %v2290_v4  ;;  %v2502_v33 = vpop.eup %2501  ;;  %v1165_v4 = vld [vmem:[#allocation4] sm:$0xff] }
 0x218   : > { %v799_v34 = vsel %vm608_vm0, %v797_v31, 0.0  ;;  %v796_v35 = vmul.f32 %v2502_v33, %v792_v32 }
 0x219   : > { %800 = vadd.xlane.f32.xlu1 %v799_v34 }
 0x21a   : > { %v798_v36 = vmul.f32 %v796_v35, %v796_v35 }
 0x21c   : > { %v802_v37 = vsel %vm608_vm0, %v798_v36, 0.0 }
 0x21d   : > { %803 = vadd.xlane.f32.xlu1 %v802_v37 }
 0x221   : > { %838 = vadd.xlane.f32.xlu1 %v837_v46 }
 0x2a2   : > { %v801_v47 = vpop.xlane.xlu1 %800 }
 0x2a3   : > { %2503 = vrsqrt.f32 %v801_v47  ;;  %vm807_vm5 = vcmp.eq.f32.partialorder %v801_v47, inf  ;;  %v810_v51 = vand.u32 2147483648, %v801_v47  ;;  %vm809_vm6 = vcmp.eq.f32.partialorder %v801_v47, 0.0 }
 0x2a6   : > { %v804_v48 = vpop.xlane.xlu1 %803 }
 0x2a7   : > { %2505 = vrsqrt.f32 %v804_v48  ;;  %vm814_vm7 = vcmp.eq.f32.partialorder %v804_v48, inf  ;;  %v817_v57 = vand.u32 2147483648, %v804_v48  ;;  %vm816_vm8 = vcmp.eq.f32.partialorder %v804_v48, 0.0 }
 0x2aa   : > { %v839_v10 = vpop.xlane.xlu1 %838 }
 0x2ab   : > { %vm845_vm11 = vcmp.eq.f32.partialorder %v839_v10, inf  ;;  %v848_v16 = vand.u32 2147483648, %v839_v10  ;;  %vm847_vm13 = vcmp.eq.f32.partialorder %v839_v10, 0.0 }
 0x2b0   : > { %v2504_v49 = vpop.eup %2503 }
 0x2b1   : > { %v806_v50 = vmul.f32 %v2504_v49, %v801_v47 }
 0x2b3   : > { %v808_v52 = vsel %vm807_vm5, %v801_v47, %v806_v50 }
 0x2b4   : > { %v2506_v53 = vpop.eup %2505  ;;  %v811_v54 = vsel %vm809_vm6, %v810_v51, %v808_v52 }
 0x2b5   : > { %v813_v55 = vmul.f32 %v2506_v53, %v804_v48  ;;  %v819_v56 = vmax.f32 %v811_v54, 1e-15 }
 0x2b7   : > { %v815_v58 = vsel %vm814_vm7, %v804_v48, %v813_v55  ;;  %2507 = vrcp.f32 %v819_v56  ;;  %vm821_vm9 = vcmp.gt.f32.partialorder %v819_v56, 0.996 }
 0x2b8   : > { %v818_v59 = vsel %vm816_vm8, %v817_v57, %v815_v58 }
 0x2b9   : > { %v820_v60 = vmax.f32 %v818_v59, 1e-15 }
 0x2bb   : > { %2509 = vrcp.f32 %v820_v60  ;;  %vm822_vm10 = vcmp.gt.f32.partialorder %v820_v60, 0.996 }
 0x2bc   : > { %2511 = vrsqrt.f32 %v839_v10 }
 0x2bd   : > { %2513 = vrsqrt.f32 %v842_v11 }
 0x2c4   : > { %v2508_v61 = vpop.eup %2507 }
 0x2c5   : > { %v824_v62 = vmul.f32 %v2508_v61, %v794_v29 }
 0x2c7   : > { %v827_v63 = vmul.f32 0.996, %v824_v62 }
 0x2c8   : > { %v2510_v0 = vpop.eup %2509 }
 0x2c9   : > { %v833_v1 = vsel %vm821_vm9, %v827_v63, %v794_v29  ;;  %v826_v2 = vmul.f32 %v2510_v0, %v796_v35  ;;  %v2512_v12 = vpop.eup %2511 }
 0x2ca   : > { %2302 = vmatprep.mubr.msk.f32.mxu0 %vm608_vm0, %v833_v1  ;;  %v2514_v13 = vpop.eup %2513  ;;  %v844_v14 = vmul.f32 %v2512_v12, %v839_v10 }
 0x2cb   : > { %v828_v3 = vmul.f32 0.996, %v826_v2  ;;  %v851_v15 = vmul.f32 %v2514_v13, %v842_v11 }
 0x2cc   : > { %v846_v17 = vsel %vm845_vm11, %v839_v10, %v844_v14 }
 0x2cd   : > { %v834_v5 = vsel %vm822_vm10, %v828_v3, %v796_v35  ;;  %v853_v19 = vsel %vm852_vm12, %v842_v11, %v851_v15  ;;  %v849_v20 = vsel %vm847_vm13, %v848_v16, %v846_v17 }
 0x2ce   : > { %2303 = vmatmul.mubr.msk.f32.vlgmr.msra.gmra.mxu0 %vm608_vm0, %v834_v5  ;;  %v856_v21 = vsel %vm854_vm14, %v855_v18, %v853_v19  ;;  %v857_v22 = vmax.f32 %v849_v20, 1e-15 }
 0x2cf   : > { %2313 = vmatpush3.msra.mxu0 %v1168_v40  ;;  %2316 = vmatprep.mubr.msk.f32.mxu0 %vm608_vm0, %v1165_v4  ;;  %v858_v23 = vmax.f32 %v856_v21, 1e-15 }
 0x2d0   : > { %2314 = vmatprep.subr.mxu0 %v1167_v6  ;;  %2515 = vtanh.f32 %v857_v22 }
 0x2d1   : > { %2315 = vmatpush3.msra.mxu0 %v1167_v6  ;;  %2517 = vtanh.f32 %v858_v23 }
 0x2d2   : > { %2317 = vmatmul.mubr.msk.f32.vlgmr.msra.gmra.mxu0 %vm608_vm0, %v1166_v7  ;;  %2319 = vmatprep.subr.mxu0 %v1170_v8  ;;  %2519 = vrcp.f32 %v857_v22 }
 0x2d3   : > { %2320 = vmatpush3.msra.mxu0 %v1170_v8  ;;  %2323 = vmatprep.mubr.msk.f32.mxu0 %vm608_vm0, %v1165_v4  ;;  %2521 = vrcp.f32 %v858_v23 }
 0x2d4   : > { %2321 = vmatprep.subr.mxu0 %v1169_v9 }
 0x2d5   : > { %2322 = vmatpush3.msra.mxu0 %v1169_v9 }
 0x2d6   : > { %2324 = vmatmul.mubr.msk.f32.vlgmr.msra.gmra.mxu0 %vm608_vm0, %v1166_v7 }
 0x2dd   : > { %v2516_v24 = vpop.eup %2515 }
 0x2de   : > { %v2518_v25 = vpop.eup %2517  ;;  %v861_v26 = vmul.f32 %v2516_v24, %v3276_v43 }
 0x2df   : > { %v2520_v27 = vpop.eup %2519  ;;  %v862_v29 = vmul.f32 %v2518_v25, %v3272_v41 }
 0x2e0   : > { %v2522_v30 = vpop.eup %2521  ;;  %v3293_v32 = vmul.f32 %v2520_v27, %v861_v26 }
 0x2e1   : > { %v3299_v35 = vmul.f32 %v2522_v30, %v862_v29 }
 0x2e2   : > { %v867_v39 = vmul.f32 %v3293_v32, %v3293_v32 }
 0x2e3   : > { %v868_v41 = vmul.f32 %v3299_v35, %v3299_v35 }
 0x2e4   : > { %v869_v42 = vsel %vm608_vm0, %v867_v39, 0.0 }
 0x2e5   : > { %v872_v43 = vsel %vm608_vm0, %v868_v41, 0.0 }
 0x38e   : > { %v3289_v28 = vpop.f32.mrf.mxu0 }
 0x390   : > { %v977_v31 = vpop.f32.mrf.mxu0 }
 0x391   : > { %2309 = vmatprep.mubr.msk.f32.mxu1 %vm608_vm0, %v977_v31 }
 0x392   : > { %v3295_v33 = vpop.f32.mrf.mxu0 }
 0x393   : > { %v1330_v34 = vmul.f32 %v3295_v33, %v3295_v33 }
 0x394   : > { %v3301_v36 = vpop.f32.mrf.mxu0 }
 0x395   : > { %v1329_v37 = vmul.f32 %v3301_v36, %v3301_v36  ;;  %v1334_v38 = vsel %vm608_vm0, %v1330_v34, 0.0 }
 0x396   : > { %1335 = vadd.xlane.f32.xlu1 %v1334_v38  ;;  %v3313_v8 = vpop.f32.mrf.mxu0 }
 0x397   : > { %v1331_v40 = vsel %vm608_vm0, %v1329_v37, 0.0  ;;  %v1400_v23 = vmul.f32 %v3313_v8, %v3313_v8  ;;  %v1172_v37 = vld [vmem:[#allocation13 + $0x8] sm:$0xff] }
 0x398   : > { %1332 = vadd.xlane.f32.xlu0 %v1331_v40  ;;  %v3316_v13 = vpop.f32.mrf.mxu0 }
 0x399   : > { %v1399_v18 = vmul.f32 %v3316_v13, %v3316_v13  ;;  %v1404_v34 = vsel %vm608_vm0, %v1400_v23, 0.0 }
 0x39a   : > { %870 = vadd.xlane.f32.xlu1 %v869_v42 }
 0x39b   : > { %v1401_v29 = vsel %vm608_vm0, %v1399_v18, 0.0 }
 0x39c   : > { %873 = vadd.xlane.f32.xlu0 %v872_v43 }
 0x41f   : > { %v1336_v44 = vpop.xlane.xlu1 %1335 }
 0x420   : > { %2523 = vrsqrt.f32 %v1336_v44  ;;  %vm1346_vm15 = vcmp.eq.f32.partialorder %v1336_v44, inf  ;;  %v1349_v51 = vand.u32 2147483648, %v1336_v44  ;;  %vm1348_vm1 = vcmp.eq.f32.partialorder %v1336_v44, 0.0 }
 0x421   : > { %v1333_v45 = vpop.xlane.xlu0 %1332 }
 0x422   : > { %2525 = vrsqrt.f32 %v1333_v45  ;;  %vm1339_vm2 = vcmp.eq.f32.partialorder %v1333_v45, inf  ;;  %v1342_v56 = vand.u32 2147483648, %v1333_v45  ;;  %vm1341_vm3 = vcmp.eq.f32.partialorder %v1333_v45, 0.0 }
 0x423   : > { %v871_v46 = vpop.xlane.xlu1 %870 }
 0x424   : > { %2527 = vrsqrt.f32 %v871_v46  ;;  %vm877_vm4 = vcmp.eq.f32.partialorder %v871_v46, inf  ;;  %v880_v62 = vand.u32 2147483648, %v871_v46  ;;  %vm879_vm5 = vcmp.eq.f32.partialorder %v871_v46, 0.0 }
 0x425   : > { %v874_v47 = vpop.xlane.xlu0 %873 }
 0x426   : > { %2529 = vrsqrt.f32 %v874_v47  ;;  %vm884_vm6 = vcmp.eq.f32.partialorder %v874_v47, inf  ;;  %v887_v2 = vand.u32 2147483648, %v874_v47  ;;  %vm886_vm7 = vcmp.eq.f32.partialorder %v874_v47, 0.0 }
 0x42d   : > { %v2524_v48 = vpop.eup %2523 }
 0x42e   : > { %v1345_v49 = vmul.f32 %v2524_v48, %v1336_v44 }
 0x42f   : > { %v2526_v50 = vpop.eup %2525 }
 0x430   : > { %v1347_v52 = vsel %vm1346_vm15, %v1336_v44, %v1345_v49  ;;  %v1338_v53 = vmul.f32 %v2526_v50, %v1333_v45 }
 0x431   : > { %v2528_v54 = vpop.eup %2527  ;;  %v1350_v55 = vsel %vm1348_vm1, %v1349_v51, %v1347_v52 }
 0x432   : > { %v1352_v57 = vmax.f32 %v1350_v55, 1e-15  ;;  %v1340_v58 = vsel %vm1339_vm2, %v1333_v45, %v1338_v53  ;;  %v876_v59 = vmul.f32 %v2528_v54, %v871_v46 }
 0x433   : > { %v2530_v60 = vpop.eup %2529  ;;  %v1343_v61 = vsel %vm1341_vm3, %v1342_v56, %v1340_v58 }
 0x434   : > { %2531 = vtanh.f32 %v1352_v57  ;;  %v1351_v63 = vmax.f32 %v1343_v61, 1e-15  ;;  %v883_v0 = vmul.f32 %v2530_v60, %v874_v47  ;;  %v878_v1 = vsel %vm877_vm4, %v871_v46, %v876_v59 }
 0x435   : > { %2533 = vrcp.f32 %v1352_v57  ;;  %v881_v3 = vsel %vm879_vm5, %v880_v62, %v878_v1 }
 0x436   : > { %2535 = vtanh.f32 %v1351_v63  ;;  %v885_v4 = vsel %vm884_vm6, %v874_v47, %v883_v0  ;;  %v889_v5 = vmax.f32 %v881_v3, 1e-15 }
 0x437   : > { %2537 = vrcp.f32 %v1351_v63  ;;  %v888_v6 = vsel %vm886_vm7, %v887_v2, %v885_v4 }
 0x438   : > { %v890_v7 = vmax.f32 %v888_v6, 1e-15  ;;  %2539 = vrcp.f32 %v889_v5  ;;  %vm891_vm9 = vcmp.gt.f32.partialorder %v889_v5, 0.996 }
 0x43a   : > { %2541 = vrcp.f32 %v890_v7  ;;  %vm892_vm8 = vcmp.gt.f32.partialorder %v890_v7, 0.996 }
 0x441   : > { %v2532_v9 = vpop.eup %2531 }
 0x442   : > { %v2534_v10 = vpop.eup %2533  ;;  %v1356_v11 = vmul.f32 %v2532_v9, %v3295_v33 }
 0x443   : > { %v2536_v12 = vpop.eup %2535 }
 0x444   : > { %v2538_v14 = vpop.eup %2537  ;;  %v3318_v15 = vmul.f32 %v2534_v10, %v1356_v11  ;;  %v1355_v16 = vmul.f32 %v2536_v12, %v3301_v36 }
 0x445   : > { %v2540_v17 = vpop.eup %2539 }
 0x446   : > { %v1362_v19 = vmul.f32 %v3318_v15, %v3318_v15  ;;  %v3325_v20 = vmul.f32 %v2538_v14, %v1355_v16  ;;  %v894_v21 = vmul.f32 %v2540_v17, %v3293_v32 }
 0x447   : > { %v2542_v22 = vpop.eup %2541 }
 0x448   : > { %v1366_v24 = vsel %vm608_vm0, %v1362_v19, 0.0  ;;  %v1361_v25 = vmul.f32 %v3325_v20, %v3325_v20  ;;  %v896_v26 = vmul.f32 %v2542_v22, %v3299_v35  ;;  %v897_v31 = vmul.f32 0.996, %v894_v21 }
 0x449   : > { %1367 = vadd.xlane.f32.xlu1 %v1366_v24 }
 0x44a   : > { %v1363_v27 = vsel %vm608_vm0, %v1361_v25, 0.0  ;;  %v898_v30 = vmul.f32 0.996, %v896_v26  ;;  %v903_v36 = vsel %vm891_vm9, %v897_v31, %v3293_v32 }
 0x44b   : > { %1364 = vadd.xlane.f32.xlu0 %v1363_v27 }
 0x44c   : > { %v904_v33 = vsel %vm892_vm8, %v898_v30, %v3299_v35  ;;  %v1171_v35 = vld [vmem:[#allocation13] sm:$0xff] }
 0x44d   : > { %1402 = vadd.xlane.f32.xlu1 %v1401_v29  ;;  %2305 = vmatprep.subr.msk.mxu1 %vm608_vm0, %v904_v33 }
 0x44e   : > { %2306 = vmatpush3.xpose.msk.msra.mxu1 %vm608_vm0, %v904_v33 }
 0x44f   : > { %1405 = vadd.xlane.f32.xlu0 %v1404_v34  ;;  %2307 = vmatprep.subr.msk.mxu1 %vm608_vm0, %v903_v36 }
 0x452   : > { %2308 = vmatpush3.xpose.msk.msra.mxu1 %vm608_vm0, %v903_v36 }
 0x453   : > { %2326 = vmatprep.subr.mxu1 %v1172_v37 }
 0x455   : > { %2310 = vmatmul.mubr.msk.f32.vlgmr.msra.gmra.mxu1 %vm608_vm0, %v3289_v28 }
 0x456   : > { %2327 = vmatpush3.msra.mxu1 %v1172_v37 }
 0x457   : > { %2328 = vmatprep.subr.mxu1 %v1171_v35 }
 0x458   : > { %2329 = vmatpush3.msra.mxu1 %v1171_v35 }
 0x4d2   : > { %v1368_v38 = vpop.xlane.xlu1 %1367 }
 0x4d3   : > { %2543 = vrsqrt.f32 %v1368_v38  ;;  %vm1378_vm10 = vcmp.eq.f32.partialorder %v1368_v38, inf  ;;  %v1381_v44 = vand.u32 2147483648, %v1368_v38  ;;  %vm1380_vm11 = vcmp.eq.f32.partialorder %v1368_v38, 0.0 }
 0x4d4   : > { %v1365_v39 = vpop.xlane.xlu0 %1364 }
 0x4d5   : > { %2545 = vrsqrt.f32 %v1365_v39  ;;  %vm1371_vm12 = vcmp.eq.f32.partialorder %v1365_v39, inf  ;;  %v1374_v47 = vand.u32 2147483648, %v1365_v39  ;;  %vm1373_vm13 = vcmp.eq.f32.partialorder %v1365_v39, 0.0 }
 0x4d6   : > { %v1403_v40 = vpop.xlane.xlu1 %1402 }
 0x4d7   : > { %2547 = vrsqrt.f32 %v1403_v40  ;;  %vm1409_vm14 = vcmp.eq.f32.partialorder %v1403_v40, inf  ;;  %v1412_v53 = vand.u32 2147483648, %v1403_v40  ;;  %vm1411_vm15 = vcmp.eq.f32.partialorder %v1403_v40, 0.0 }
 0x4d8   : > { %v1406_v32 = vpop.xlane.xlu0 %1405 }
 0x4d9   : > { %2549 = vrsqrt.f32 %v1406_v32  ;;  %vm1416_vm1 = vcmp.eq.f32.partialorder %v1406_v32, inf  ;;  %v1419_v59 = vand.u32 2147483648, %v1406_v32  ;;  %vm1418_vm2 = vcmp.eq.f32.partialorder %v1406_v32, 0.0 }
 0x4e0   : > { %v2544_v41 = vpop.eup %2543 }
 0x4e1   : > { %v1377_v42 = vmul.f32 %v2544_v41, %v1368_v38 }
 0x4e2   : > { %v2546_v43 = vpop.eup %2545 }
 0x4e3   : > { %v1379_v28 = vsel %vm1378_vm10, %v1368_v38, %v1377_v42  ;;  %v1370_v45 = vmul.f32 %v2546_v43, %v1365_v39 }
 0x4e4   : > { %v2548_v46 = vpop.eup %2547  ;;  %v1382_v48 = vsel %vm1380_vm11, %v1381_v44, %v1379_v28 }
 0x4e5   : > { %v1408_v49 = vmul.f32 %v2548_v46, %v1403_v40  ;;  %v1372_v50 = vsel %vm1371_vm12, %v1365_v39, %v1370_v45  ;;  %v1384_v51 = vmax.f32 %v1382_v48, 1e-15 }
 0x4e6   : > { %v2550_v52 = vpop.eup %2549  ;;  %v1375_v54 = vsel %vm1373_vm13, %v1374_v47, %v1372_v50 }
 0x4e7   : > { %v1410_v55 = vsel %vm1409_vm14, %v1403_v40, %v1408_v49  ;;  %v1415_v56 = vmul.f32 %v2550_v52, %v1406_v32  ;;  %v1383_v57 = vmax.f32 %v1375_v54, 1e-15  ;;  %2551 = vrcp.f32 %v1384_v51 }
 0x4e8   : > { %v1413_v58 = vsel %vm1411_vm15, %v1412_v53, %v1410_v55  ;;  %vm1386_vm4 = vcmp.gt.f32.partialorder %v1384_v51, 0.996 }
 0x4e9   : > { %v1421_v60 = vmax.f32 %v1413_v58, 1e-15  ;;  %v1417_v61 = vsel %vm1416_vm1, %v1406_v32, %v1415_v56  ;;  %2553 = vrcp.f32 %v1383_v57  ;;  %vm1385_vm3 = vcmp.gt.f32.partialorder %v1383_v57, 0.996 }
 0x4ea   : > { %v1420_v62 = vsel %vm1418_vm2, %v1419_v59, %v1417_v61 }
 0x4eb   : > { %2555 = vtanh.f32 %v1421_v60  ;;  %v1422_v63 = vmax.f32 %v1420_v62, 1e-15 }
 0x4ec   : > { %2557 = vrcp.f32 %v1421_v60 }
 0x4ed   : > { %2559 = vtanh.f32 %v1422_v63 }
 0x4ee   : > { %2561 = vrcp.f32 %v1422_v63 }
 0x4f4   : > { %v2552_v0 = vpop.eup %2551 }
 0x4f5   : > { %v1390_v2 = vmul.f32 %v2552_v0, %v3318_v15 }
 0x4f6   : > { %v2554_v1 = vpop.eup %2553 }
 0x4f7   : > { %v1388_v3 = vmul.f32 %v2554_v1, %v3325_v20  ;;  %v1392_v5 = vmul.f32 0.996, %v1390_v2 }
 0x4f8   : > { %v2556_v4 = vpop.eup %2555 }
 0x4f9   : > { %v2558_v6 = vpop.eup %2557  ;;  %v1391_v7 = vmul.f32 0.996, %v1388_v3  ;;  %v1425_v9 = vmul.f32 %v2556_v4, %v3316_v13  ;;  %v1398_v17 = vsel %vm1386_vm4, %v1392_v5, %v3318_v15  ;;  %vm1788_vm4 = vcmask 261120  }
 0x4fa   : > { %v2560_v10 = vpop.eup %2559 }
 0x4fb   : > { %v1397_v11 = vsel %vm1385_vm3, %v1391_v7, %v3325_v20  ;;  %v1428_v12 = vmul.f32 %v2558_v6, %v1425_v9  ;;  %v1426_v14 = vmul.f32 %v2560_v10, %v3313_v8  ;;  %v2562_v16 = vpop.eup %2561 }
 0x4fc   : > { %2330 = vmatprep.mubr.msk.f32.mxu1 %vm608_vm0, %v1397_v11 }
 0x4fd   : > { %2331 = vmatmul.mubr.msk.f32.vlgmr.msra.gmra.mxu1 %vm608_vm0, %v1398_v17  ;;  %v1431_v18 = vmul.f32 %v1428_v12, %v1428_v12  ;;  %v1430_v19 = vmul.f32 %v2562_v16, %v1426_v14 }
 0x4ff   : > { %v1433_v21 = vsel %vm608_vm0, %v1431_v18, 0.0  ;;  %v1432_v13 = vmul.f32 %v1430_v19, %v1430_v19 }
 0x500   : > { %1434 = vadd.xlane.f32.xlu1 %v1433_v21 }
 0x501   : > { %v1436_v22 = vsel %vm608_vm0, %v1432_v13, 0.0 }
 0x502   : > { %1437 = vadd.xlane.f32.xlu0 %v1436_v22 }
 0x515   : > { %v2311_v20 = vpop.f32.mrf.mxu1 }
 0x516   : > { %v1076_v23 = vsel %vm608_vm0, %v2311_v20, -inf }
 0x517   : > { %1077 = vmax.xlane.f32.xlu1 %v1076_v23  ;;  %v1064_v8 = vpop.f32.mrf.mxu1 }
 0x518   : > { %v1073_v24 = vsel %vm608_vm0, %v1064_v8, -inf }
 0x519   : > { %1074 = vmax.xlane.f32.xlu0 %v1073_v24 }
 0x589   : > { %v1435_v15 = vpop.xlane.xlu1 %1434 }
 0x58a   : > { %2563 = vrsqrt.f32 %v1435_v15  ;;  %vm1441_vm5 = vcmp.eq.f32.partialorder %v1435_v15, inf  ;;  %v1444_v30 = vand.u32 2147483648, %v1435_v15  ;;  %vm1443_vm6 = vcmp.eq.f32.partialorder %v1435_v15, 0.0 }
 0x58b   : > { %v1438_v25 = vpop.xlane.xlu0 %1437 }
 0x58c   : > { %2565 = vrsqrt.f32 %v1438_v25  ;;  %vm1448_vm7 = vcmp.eq.f32.partialorder %v1438_v25, inf  ;;  %v1451_v34 = vand.u32 2147483648, %v1438_v25  ;;  %vm1450_vm8 = vcmp.eq.f32.partialorder %v1438_v25, 0.0 }
 0x597   : > { %v2564_v26 = vpop.eup %2563 }
 0x598   : > { %v1440_v27 = vmul.f32 %v2564_v26, %v1435_v15 }
 0x599   : > { %v2566_v29 = vpop.eup %2565 }
 0x59a   : > { %v1447_v31 = vmul.f32 %v2566_v29, %v1438_v25  ;;  %v1442_v33 = vsel %vm1441_vm5, %v1435_v15, %v1440_v27 }
 0x59b   : > { %v1445_v36 = vsel %vm1443_vm6, %v1444_v30, %v1442_v33 }
 0x59c   : > { %v1449_v37 = vsel %vm1448_vm7, %v1438_v25, %v1447_v31  ;;  %v1453_v35 = vmax.f32 %v1445_v36, 1e-15 }
 0x59d   : > { %v1452_v38 = vsel %vm1450_vm8, %v1451_v34, %v1449_v37 }
 0x59e   : > { %v1454_v39 = vmax.f32 %v1452_v38, 1e-15  ;;  %2567 = vrcp.f32 %v1453_v35  ;;  %vm1455_vm10 = vcmp.gt.f32.partialorder %v1453_v35, 0.996 }
 0x5a0   : > { %2569 = vrcp.f32 %v1454_v39  ;;  %vm1456_vm9 = vcmp.gt.f32.partialorder %v1454_v39, 0.996  ;;  %v1078_v48 = vpop.xlane.xlu1 %1077 }
 0x5a1   : > { %v1080_v50 = vsub.f32 %v2311_v20, %v1078_v48 }
 0x5a2   : > { %v1075_v49 = vpop.xlane.xlu0 %1074 }
 0x5a3   : > { %v1079_v51 = vsub.f32 %v1064_v8, %v1075_v49  ;;  %v1083_v52 = vmul.f32 1.442695, %v1080_v50 }
 0x5a5   : > { %v1081_v53 = vmul.f32 1.442695, %v1079_v51  ;;  %2571 = vpow2.f32 %v1083_v52 }
 0x5a7   : > { %2573 = vpow2.f32 %v1081_v53 }
 0x5ab   : > { %v2568_v40 = vpop.eup %2567 }
 0x5ac   : > { %v1458_v32 = vmul.f32 %v2568_v40, %v1428_v12 }
 0x5ad   : > { %v2570_v41 = vpop.eup %2569 }
 0x5ae   : > { %v1460_v42 = vmul.f32 %v2570_v41, %v1430_v19  ;;  %v1461_v44 = vmul.f32 0.996, %v1458_v32 }
 0x5b0   : > { %v1462_v43 = vmul.f32 0.996, %v1460_v42  ;;  %v1467_v45 = vsel %vm1455_vm10, %v1461_v44, %v1428_v12 }
 0x5b2   : > { %v1468_v28 = vsel %vm1456_vm9, %v1462_v43, %v1430_v19  ;;  %v2572_v56 = vpop.eup %2571 }
 0x5b3   : > { %2333 = vmatprep.subr.msk.mxu0 %vm608_vm0, %v1468_v28  ;;  %v1088_v60 = vsel %vm608_vm0, %v2572_v56, 0.0 }
 0x5b4   : > { %2334 = vmatpush3.xpose.msk.msra.mxu0 %vm608_vm0, %v1468_v28  ;;  %v2574_v59 = vpop.eup %2573 }
 0x5b5   : > { %2335 = vmatprep.subr.msk.mxu0 %vm608_vm0, %v1467_v45  ;;  %v1085_v61 = vsel %vm608_vm0, %v2574_v59, 0.0 }
 0x5b8   : > { %2336 = vmatpush3.xpose.msk.msra.mxu0 %vm608_vm0, %v1467_v45 }
 0x5bd   : > { %v2332_v46 = vpop.f32.mrf.mxu1 }
 0x5bf   : > { %v1541_v47 = vpop.f32.mrf.mxu1 }
 0x5c0   : > { %2337 = vmatprep.mubr.msk.f32.mxu0 %vm608_vm0, %v1541_v47 }
 0x5c1   : > { %2338 = vmatmul.mubr.msk.f32.vlgmr.msra.gmra.mxu0 %vm608_vm0, %v2332_v46 }
 0x681   : > { %v2339_v54 = vpop.f32.mrf.mxu0 }
 0x682   : > { %v1640_v55 = vsel %vm608_vm0, %v2339_v54, -inf }
 0x683   : > { %1641 = vmax.xlane.f32.xlu1 %v1640_v55  ;;  %v1628_v57 = vpop.f32.mrf.mxu0 }
 0x684   : > { %v1637_v58 = vsel %vm608_vm0, %v1628_v57, -inf }
 0x685   : > { %1638 = vmax.xlane.f32.xlu0 %v1637_v58 }
 0x687   : > { %1089 = vadd.xlane.f32.xlu1 %v1088_v60 }
 0x689   : > { %1086 = vadd.xlane.f32.xlu0 %v1085_v61 }
 0x70c   : > { %v1642_v62 = vpop.xlane.xlu1 %1641 }
 0x70d   : > { %v1644_v63 = vsub.f32 %v2339_v54, %v1642_v62 }
 0x70e   : > { %v1639_v0 = vpop.xlane.xlu0 %1638 }
 0x70f   : > { %v1647_v1 = vmul.f32 1.442695, %v1644_v63  ;;  %v1643_v2 = vsub.f32 %v1628_v57, %v1639_v0 }
 0x710   : > { %v1090_v3 = vpop.xlane.xlu1 %1089 }
 0x711   : > { %2575 = vpow2.f32 %v1647_v1  ;;  %v1645_v4 = vmul.f32 1.442695, %v1643_v2 }
 0x712   : > { %2577 = vrcp.f32 %v1090_v3  ;;  %v1087_v5 = vpop.xlane.xlu0 %1086 }
 0x713   : > { %2579 = vpow2.f32 %v1645_v4 }
 0x714   : > { %2581 = vrcp.f32 %v1087_v5 }
 0x71e   : > { %v2576_v6 = vpop.eup %2575 }
 0x71f   : > { %v2578_v7 = vpop.eup %2577  ;;  %v1652_v9 = vsel %vm608_vm0, %v2576_v6, 0.0 }
 0x720   : > { %v2580_v10 = vpop.eup %2579  ;;  %1653 = vadd.xlane.f32.xlu1 %v1652_v9  ;;  %v1094_v11 = vmul.f32 %v2578_v7, %v2572_v56 }
 0x721   : > { %v2582_v12 = vpop.eup %2581  ;;  %v1649_v14 = vsel %vm608_vm0, %v2580_v10, 0.0 }
 0x722   : > { %1650 = vadd.xlane.f32.xlu0 %v1649_v14  ;;  %v1096_v16 = vmul.f32 %v1094_v11, %v1094_v11  ;;  %v1092_v17 = vmul.f32 %v2582_v12, %v2574_v59 }
 0x724   : > { %v1100_v18 = vsel %vm608_vm0, %v1096_v16, 0.0  ;;  %v1095_v19 = vmul.f32 %v1092_v17, %v1092_v17 }
 0x725   : > { %1101 = vadd.xlane.f32.xlu1 %v1100_v18 }
 0x726   : > { %v1097_v21 = vsel %vm608_vm0, %v1095_v19, 0.0  ;;  %v2484_v19 = vld [vmem:[%s3258_s21 + $0x10] ss:$8 sps:$4 sm:$0xff]  }
 0x727   : > { %1098 = vadd.xlane.f32.xlu0 %v1097_v21  ;;  %v2486_v21 = vld [vmem:[%s3258_s21 + $0x14] ss:$8 sps:$4 sm:$0xff]  }
 0x728   : > { %1804 = vmatprep.subr.bf16.mxu1 %v2486_v21 }
 0x729   : > { %1805 = vmatpush1.bf16.msra.mxu1 %v2484_v19 }
 0x7a9   : > { %v1654_v13 = vpop.xlane.xlu1 %1653 }
 0x7aa   : > { %2583 = vrcp.f32 %v1654_v13  ;;  %v2489_v13 = vld [vmem:[%s3258_s21 + $0x4] ss:$8 sps:$4 sm:$0xff]  }
 0x7ab   : > { %v1651_v22 = vpop.xlane.xlu0 %1650  ;;  %1806 = vmatprep.subr.bf16.mxu1 %v2489_v13 }
 0x7ac   : > { %2585 = vrcp.f32 %v1651_v22  ;;  %v2983_v22 = vmov 0  }
 0x7ad   : > { %1824 = vmatprep.mubr.bf16.mxu1 %v2983_v22 }
 0x7ae   : > { %v1102_v20 = vpop.xlane.xlu1 %1101 }
 0x7af   : > { %2587 = vrsqrt.f32 %v1102_v20  ;;  %vm1112_vm11 = vcmp.eq.f32.partialorder %v1102_v20, inf  ;;  %v1115_v34 = vand.u32 2147483648, %v1102_v20  ;;  %vm1114_vm12 = vcmp.eq.f32.partialorder %v1102_v20, 0.0 }
 0x7b0   : > { %v1099_v23 = vpop.xlane.xlu0 %1098 }
 0x7b1   : > { %2589 = vrsqrt.f32 %v1099_v23  ;;  %vm1105_vm13 = vcmp.eq.f32.partialorder %v1099_v23, inf  ;;  %v1108_v39 = vand.u32 2147483648, %v1099_v23  ;;  %vm1107_vm14 = vcmp.eq.f32.partialorder %v1099_v23, 0.0 }
 0x7b7   : > { %v2584_v8 = vpop.eup %2583 }
 0x7b8   : > { %v3371_v24 = vmul.f32 %v2584_v8, %v2576_v6 }
 0x7b9   : > { %v2586_v15 = vpop.eup %2585 }
 0x7ba   : > { %v1660_v25 = vmul.f32 %v3371_v24, %v3371_v24  ;;  %v3375_v26 = vmul.f32 %v2586_v15, %v2580_v10 }
 0x7bc   : > { %v2588_v27 = vpop.eup %2587  ;;  %v1664_v29 = vsel %vm608_vm0, %v1660_v25, 0.0  ;;  %v1659_v30 = vmul.f32 %v3375_v26, %v3375_v26 }
 0x7bd   : > { %v1111_v31 = vmul.f32 %v2588_v27, %v1102_v20  ;;  %1665 = vadd.xlane.f32.xlu1 %v1664_v29 }
 0x7be   : > { %v2590_v33 = vpop.eup %2589  ;;  %v1661_v36 = vsel %vm608_vm0, %v1659_v30, 0.0 }
 0x7bf   : > { %v1113_v37 = vsel %vm1112_vm11, %v1102_v20, %v1111_v31  ;;  %v1104_v35 = vmul.f32 %v2590_v33, %v1099_v23  ;;  %1662 = vadd.xlane.f32.xlu0 %v1661_v36  ;;  %v2487_v20 = vld [vmem:[%s3258_s21] ss:$8 sps:$4 sm:$0xff]   ;;  %s589_s21 = scalar_lea.vmem %s3556_s30, %s3422_s18 }
 0x7c0   : > { %v1116_v38 = vsel %vm1114_vm12, %v1115_v34, %v1113_v37  ;;  %1807 = vmatpush1.bf16.msra.mxu1 %v2487_v20 }
 0x7c1   : > { %v1118_v40 = vmax.f32 %v1116_v38, 1e-15  ;;  %v1106_v32 = vsel %vm1105_vm13, %v1099_v23, %v1104_v35  ;;  %v2490_v23 = vld [vmem:[%s3527_s8] sm:$0xff]  }
 0x7c2   : > { %v1109_v41 = vsel %vm1107_vm14, %v1108_v39, %v1106_v32 }
 0x7c3   : > { %2591 = vtanh.f32 %v1118_v40  ;;  %v1117_v42 = vmax.f32 %v1109_v41, 1e-15  ;;  %2242 = vmatmul.mubr.msk.bf16.vlgmr.msra.gmra.mxu1 %vm1788_vm4, %v2490_v23 }
 0x7c4   : > { %2593 = vrcp.f32 %v1118_v40 }
 0x7c5   : > { %2595 = vtanh.f32 %v1117_v42 }
 0x7c6   : > { %2597 = vrcp.f32 %v1117_v42 }
 0x7d0   : > { %v2592_v43 = vpop.eup %2591 }
 0x7d1   : > { %v2594_v44 = vpop.eup %2593  ;;  %v1122_v28 = vmul.f32 %v2592_v43, %v1094_v11 }
 0x7d2   : > { %v2596_v45 = vpop.eup %2595 }
 0x7d3   : > { %v3381_v46 = vmul.f32 %v2594_v44, %v1122_v28  ;;  %v1121_v47 = vmul.f32 %v2596_v45, %v1092_v17  ;;  %v2598_v48 = vpop.eup %2597 }
 0x7d5   : > { %v1128_v49 = vmul.f32 %v3381_v46, %v3381_v46  ;;  %v3385_v50 = vmul.f32 %v2598_v48, %v1121_v47 }
 0x7d7   : > { %v1132_v51 = vsel %vm608_vm0, %v1128_v49, 0.0  ;;  %v1127_v52 = vmul.f32 %v3385_v50, %v3385_v50 }
 0x7d8   : > { %1133 = vadd.xlane.f32.xlu1 %v1132_v51 }
 0x7d9   : > { %v1129_v53 = vsel %vm608_vm0, %v1127_v52, 0.0 }
 0x7da   : > { %1130 = vadd.xlane.f32.xlu0 %v1129_v53 }
 0x846   : > { %v1666_v54 = vpop.xlane.xlu1 %1665 }
 0x847   : > { %2599 = vrsqrt.f32 %v1666_v54  ;;  %vm1676_vm15 = vcmp.eq.f32.partialorder %v1666_v54, inf  ;;  %v1679_v59 = vand.u32 2147483648, %v1666_v54  ;;  %vm1678_vm1 = vcmp.eq.f32.partialorder %v1666_v54, 0.0 }
 0x848   : > { %v1663_v55 = vpop.xlane.xlu0 %1662 }
 0x849   : > { %2601 = vrsqrt.f32 %v1663_v55  ;;  %vm1669_vm2 = vcmp.eq.f32.partialorder %v1663_v55, inf  ;;  %v1672_v63 = vand.u32 2147483648, %v1663_v55  ;;  %vm1671_vm3 = vcmp.eq.f32.partialorder %v1663_v55, 0.0 }
 0x854   : > { %v2600_v56 = vpop.eup %2599 }
 0x855   : > { %v1675_v57 = vmul.f32 %v2600_v56, %v1666_v54 }
 0x856   : > { %v2602_v58 = vpop.eup %2601 }
 0x857   : > { %v1677_v60 = vsel %vm1676_vm15, %v1666_v54, %v1675_v57  ;;  %v1668_v61 = vmul.f32 %v2602_v58, %v1663_v55 }
 0x858   : > { %v1680_v62 = vsel %vm1678_vm1, %v1679_v59, %v1677_v60 }
 0x859   : > { %v1682_v0 = vmax.f32 %v1680_v62, 1e-15  ;;  %v1670_v1 = vsel %vm1669_vm2, %v1663_v55, %v1668_v61  ;;  %vm595_vm2 = vcmask 7168  }
 0x85a   : > { %v1673_v2 = vsel %vm1671_vm3, %v1672_v63, %v1670_v1 }
 0x85b   : > { %2603 = vtanh.f32 %v1682_v0  ;;  %v1681_v3 = vmax.f32 %v1673_v2, 1e-15 }
 0x85c   : > { %2605 = vrcp.f32 %v1682_v0 }
 0x85d   : > { %2607 = vtanh.f32 %v1681_v3 }
 0x85e   : > { %2609 = vrcp.f32 %v1681_v3 }
 0x861   : > { %v1134_v8 = vpop.xlane.xlu1 %1133 }
 0x862   : > { %2611 = vrsqrt.f32 %v1134_v8  ;;  %vm1144_vm5 = vcmp.eq.f32.partialorder %v1134_v8, inf  ;;  %v1147_v33 = vand.u32 2147483648, %v1134_v8  ;;  %vm1146_vm7 = vcmp.eq.f32.partialorder %v1134_v8, 0.0 }
 0x868   : > { %v2604_v4 = vpop.eup %2603 }
 0x869   : > { %v2606_v5 = vpop.eup %2605  ;;  %v1686_v6 = vmul.f32 %v2604_v4, %v3371_v24  ;;  %v1131_v24 = vpop.xlane.xlu0 %1130 }
 0x86a   : > { %v2608_v7 = vpop.eup %2607  ;;  %2613 = vrsqrt.f32 %v1131_v24  ;;  %vm1137_vm6 = vcmp.eq.f32.partialorder %v1131_v24, inf  ;;  %v1140_v36 = vand.u32 2147483648, %v1131_v24  ;;  %vm1139_vm8 = vcmp.eq.f32.partialorder %v1131_v24, 0.0 }
 0x86b   : > { %v3392_v9 = vmul.f32 %v2606_v5, %v1686_v6  ;;  %v1685_v10 = vmul.f32 %v2608_v7, %v3375_v26  ;;  %v2610_v11 = vpop.eup %2609 }
 0x86d   : > { %v1692_v12 = vmul.f32 %v3392_v9, %v3392_v9  ;;  %v3397_v14 = vmul.f32 %v2610_v11, %v1685_v10 }
 0x86f   : > { %v1696_v16 = vsel %vm608_vm0, %v1692_v12, 0.0  ;;  %v1691_v17 = vmul.f32 %v3397_v14, %v3397_v14  ;;  %v2612_v15 = vpop.eup %2611 }
 0x870   : > { %1697 = vadd.xlane.f32.xlu1 %v1696_v16  ;;  %v1143_v27 = vmul.f32 %v2612_v15, %v1134_v8 }
 0x871   : > { %v1693_v18 = vsel %vm608_vm0, %v1691_v17, 0.0 }
 0x872   : > { %1694 = vadd.xlane.f32.xlu0 %v1693_v18  ;;  %v1145_v31 = vsel %vm1144_vm5, %v1134_v8, %v1143_v27 }
 0x873   : > { %v1148_v37 = vsel %vm1146_vm7, %v1147_v33, %v1145_v31 }
 0x874   : > { %v1150_v38 = vmax.f32 %v1148_v37, 1e-15 }
 0x876   : > { %vm1152_vm13 = vcmp.gt.f32.partialorder %v1150_v38, 0.996 }
 0x877   : > { %v2614_v25 = vpop.eup %2613 }
 0x878   : > { %v1136_v30 = vmul.f32 %v2614_v25, %v1131_v24 }
 0x87a   : > { %v1138_v34 = vsel %vm1137_vm6, %v1131_v24, %v1136_v30 }
 0x87b   : > { %v1141_v35 = vsel %vm1139_vm8, %v1140_v36, %v1138_v34 }
 0x87c   : > { %v1149_v39 = vmax.f32 %v1141_v35, 1e-15 }
 0x87e   : > { %vm1151_vm15 = vcmp.gt.f32.partialorder %v1149_v39, 0.996 }
 0x883   : > { %v3446_v20 = vpop.f32.mrf.mxu1 }
 0x885   : > { %v3448_v23 = vpop.f32.mrf.mxu1 }
 0x887   : > { %v3450_v8 = vpop.f32.mrf.mxu1 }
 0x889   : > { %v3452_v24 = vpop.f32.mrf.mxu1 }
 0x8f9   : > { %v1698_v26 = vpop.xlane.xlu1 %1697 }
 0x8fa   : > { %2615 = vrsqrt.f32 %v1698_v26  ;;  %vm1708_vm9 = vcmp.eq.f32.partialorder %v1698_v26, inf  ;;  %v1711_v42 = vand.u32 2147483648, %v1698_v26  ;;  %vm1710_vm10 = vcmp.eq.f32.partialorder %v1698_v26, 0.0 }
 0x8fb   : > { %v1695_v29 = vpop.xlane.xlu0 %1694 }
 0x8fc   : > { %2617 = vrsqrt.f32 %v1695_v29  ;;  %vm1701_vm11 = vcmp.eq.f32.partialorder %v1695_v29, inf  ;;  %v1704_v28 = vand.u32 2147483648, %v1695_v29  ;;  %vm1703_vm12 = vcmp.eq.f32.partialorder %v1695_v29, 0.0 }
 0x8fd   : > { %2619 = vrcp.f32 %v1150_v38 }
 0x8fe   : > { %2621 = vrcp.f32 %v1149_v39 }
 0x907   : > { %v2616_v40 = vpop.eup %2615 }
 0x908   : > { %v1707_v32 = vmul.f32 %v2616_v40, %v1698_v26 }
 0x909   : > { %v2618_v41 = vpop.eup %2617 }
 0x90a   : > { %v1700_v43 = vmul.f32 %v2618_v41, %v1695_v29  ;;  %v1709_v44 = vsel %vm1708_vm9, %v1698_v26, %v1707_v32  ;;  %v2620_v52 = vpop.eup %2619 }
 0x90b   : > { %v1712_v45 = vsel %vm1710_vm10, %v1711_v42, %v1709_v44  ;;  %v2622_v53 = vpop.eup %2621  ;;  %v1156_v54 = vmul.f32 %v2620_v52, %v3381_v46 }
 0x90c   : > { %v1714_v47 = vmax.f32 %v1712_v45, 1e-15  ;;  %v1702_v48 = vsel %vm1701_vm11, %v1695_v29, %v1700_v43  ;;  %v1154_v55 = vmul.f32 %v2622_v53, %v3385_v50 }
 0x90d   : > { %v1705_v49 = vsel %vm1703_vm12, %v1704_v28, %v1702_v48  ;;  %v1158_v57 = vmul.f32 0.996, %v1156_v54 }
 0x90e   : > { %2623 = vrcp.f32 %v1714_v47  ;;  %v1713_v51 = vmax.f32 %v1705_v49, 1e-15  ;;  %v1157_v61 = vmul.f32 0.996, %v1154_v55  ;;  %vm1716_vm14 = vcmp.gt.f32.partialorder %v1714_v47, 0.996 }
 0x90f   : > { %v1164_v63 = vsel %vm1152_vm13, %v1158_v57, %v3381_v46  ;;  %v2984_v46 = vmov -inf  }
 0x910   : > { %2625 = vrcp.f32 %v1713_v51  ;;  %vm1715_vm1 = vcmp.gt.f32.partialorder %v1713_v51, 0.996  ;;  %v1163_v3 = vsel %vm1151_vm15, %v1157_v61, %v3385_v50  ;;  %596 = vst.msk [vmem:[%s3428_s16] sm:$0xff] %vm595_vm2, %v2984_v46  ;;  %597 = vst.msk [vmem:[%s3428_s16 + $0x8] sm:$0xff] %vm595_vm2, %v2984_v46  ;;  %v2985_v50 = vmov 0.0  }
 0x911   : > { %598 = vst.msk [vmem:[%s3434_s13] sm:$0xff] %vm595_vm2, %v2985_v50  ;;  %599 = vst.msk [vmem:[%s3434_s13 + $0x8] sm:$0xff] %vm595_vm2, %v2985_v50 }
 0x91b   : > { %v2624_v56 = vpop.eup %2623 }
 0x91c   : > { %v1720_v58 = vmul.f32 %v2624_v56, %v3392_v9 }
 0x91d   : > { %v2626_v59 = vpop.eup %2625 }
 0x91e   : > { %v1722_v60 = vmul.f32 0.996, %v1720_v58  ;;  %v1718_v62 = vmul.f32 %v2626_v59, %v3397_v14 }
 0x920   : > { %v1728_v0 = vsel %vm1716_vm14, %v1722_v60, %v3392_v9  ;;  %v1721_v1 = vmul.f32 0.996, %v1718_v62 }
 0x921   : > { %v1730_v2 = vadd.f32 %v1728_v0, %v1164_v63 }
 0x922   : > { %v1727_v4 = vsel %vm1715_vm1, %v1721_v1, %v3397_v14 }
 0x923   : > { %v1732_v5 = vmul.f32 0.2, %v1730_v2  ;;  %v1729_v6 = vadd.f32 %v1727_v4, %v1163_v3 }
 0x925   : > { %v1736_v7 = vsel %vm608_vm0, %v1732_v5, -inf  ;;  %v1731_v10 = vmul.f32 0.2, %v1729_v6 }
 0x926   : > { %1737 = vmax.xlane.f32.xlu1 %v1736_v7 }
 0x927   : > { %v1733_v11 = vsel %vm608_vm0, %v1731_v10, -inf }
 0x928   : > { %1734 = vmax.xlane.f32.xlu0 %v1733_v11 }
 0x9af   : > { %v1738_v9 = vpop.xlane.xlu1 %1737 }
 0x9b0   : > { %v1740_v12 = vsub.f32 %v1732_v5, %v1738_v9 }
 0x9b1   : > { %v1735_v14 = vpop.xlane.xlu0 %1734 }
 0x9b2   : > { %v1743_v16 = vmul.f32 1.442695, %v1740_v12  ;;  %v1739_v17 = vsub.f32 %v1731_v10, %v1735_v14 }
 0x9b4   : > { %2627 = vpow2.f32 %v1743_v16  ;;  %v1741_v18 = vmul.f32 1.442695, %v1739_v17 }
 0x9b6   : > { %2629 = vpow2.f32 %v1741_v18 }
 0x9c1   : > { %v2628_v19 = vpop.eup %2627 }
 0x9c2   : > { %v1748_v21 = vsel %vm608_vm0, %v2628_v19, 0.0 }
 0x9c3   : > { %v2630_v13 = vpop.eup %2629  ;;  %1749 = vadd.xlane.f32.xlu1 %v1748_v21 }
 0x9c4   : > { %v1745_v22 = vsel %vm608_vm0, %v2630_v13, 0.0 }
 0x9c5   : > { %1746 = vadd.xlane.f32.xlu0 %v1745_v22 }
 0xa4c   : > { %v1750_v15 = vpop.xlane.xlu1 %1749 }
 0xa4d   : > { %2631 = vrcp.f32 %v1750_v15 }
 0xa4e   : > { %v1747_v25 = vpop.xlane.xlu0 %1746 }
 0xa4f   : > { %2633 = vrcp.f32 %v1747_v25 }
 0xa5a   : > { %v2632_v26 = vpop.eup %2631 }
 0xa5b   : > { %v1754_v27 = vmul.f32 %v2632_v26, %v2628_v19  ;;  %1841 = sbr.rel (%p2244_p3) target bundleno = 3098 (0xc1a), region = 104 }
 0xa5c   : > { %v2634_v29 = vpop.eup %2633 }
 0xa5d   : > { %1756 = vst.msk [vmem:[%s589_s21 + $0x8] sm:$0xff] %vm608_vm0, %v1754_v27  ;;  %v1752_v30 = vmul.f32 %v2634_v29, %v2630_v13 }
 0xa5f   : > { %1755 = vst.msk [vmem:[%s589_s21] sm:$0xff] %vm608_vm0, %v1752_v30 }
 0xa60   : > { %v1842_v31 = vlaneseq  ;;  %v1845_v33 = vstv %s2243_s1  ;;  %v2986_v43 = vmov 0   ;;  %v1854_v44 = vld [vmem:[%s3428_s16] sm:$0xff]  ;;  %v1855_v47 = vld [vmem:[%s3428_s16 + $0x8] sm:$0xff] }
 0xa61   : > { %2635 = vset.pattern.permute.xlu1 %v2986_v43  ;;  %2636 = vset.pattern.permute.xlu0 %v2986_v43  ;;  %v1864_v10 = vld [vmem:[%s3434_s13] sm:$0xff]  ;;  %v1865_v9 = vld [vmem:[%s3434_s13 + $0x8] sm:$0xff] }
 0xa62   : > { %v1843_v34 = vand.u32 127, %v1842_v31 }
 0xa64   : > { %v1844_v36 = vadd.s32 128, %v1843_v34  ;;  %v1846_v37 = vadd.s32 %v1845_v33, %v1843_v34 }
 0xa66   : > { %v1847_v35 = vadd.s32 %v1845_v33, %v1844_v36  ;;  %vm1848_vm3 = vcmp.lt.s32.totalorder %v1846_v37, 500 }
 0xa67   : > { %v1850_v38 = vsel %vm1848_vm3, %v3446_v20, -inf  ;;  %v1852_v40 = vsel %vm1848_vm3, %v3450_v8, -inf }
 0xa68   : > { %vm1849_vm4 = vcmp.lt.s32.totalorder %v1847_v35, 500 }
 0xa69   : > { %v1851_v39 = vsel %vm1849_vm4, %v3448_v23, -inf  ;;  %v1853_v32 = vsel %vm1849_vm4, %v3452_v24, -inf }
 0xa6a   : > { %v1856_v41 = vmax.f32 %v1850_v38, %v1851_v39  ;;  %v1859_v42 = vmax.f32 %v1852_v40, %v1853_v32 }
 0xa6c   : > { %1857 = vmax.xlane.f32.xlu0 %v1856_v41 }
 0xa70   : > { %1860 = vmax.xlane.f32.xlu0 %v1859_v42 }
 0xaf5   : > { %v1858_v28 = vpop.xlane.xlu0 %1857 }
 0xaf6   : > { %v1862_v45 = vmax.f32 %v1854_v44, %v1858_v28 }
 0xaf8   : > { %v1866_v48 = vsub.f32 %v1854_v44, %v1862_v45  ;;  %1907 = vst.msk [vmem:[%s3428_s16] sm:$0xff] %vm595_vm2, %v1862_v45  ;;  %1876 = vperm.xlu1 %2635, %v1862_v45  }
 0xaf9   : > { %v1861_v49 = vpop.xlane.xlu0 %1860 }
 0xafa   : > { %v1863_v51 = vmax.f32 %v1855_v47, %v1861_v49  ;;  %v1868_v5 = vmul.f32 1.442695, %v1866_v48 }
 0xafc   : > { %v1867_v52 = vsub.f32 %v1855_v47, %v1863_v51  ;;  %1908 = vst.msk [vmem:[%s3428_s16 + $0x8] sm:$0xff] %vm595_vm2, %v1863_v51  ;;  %1881 = vperm.xlu1 %2635, %v1863_v51  }
 0xafe   : > { %v1870_v6 = vmul.f32 1.442695, %v1867_v52 }
 0xb73   : > { %v1877_v53 = vpop.permute.xlu1 %1876 }
 0xb74   : > { %v1884_v54 = vsub.f32 %v1850_v38, %v1877_v53  ;;  %v1885_v55 = vsub.f32 %v1851_v39, %v1877_v53 }
 0xb76   : > { %v1888_v56 = vmul.f32 1.442695, %v1884_v54  ;;  %v1890_v57 = vmul.f32 1.442695, %v1885_v55 }
 0xb77   : > { %v1882_v58 = vpop.permute.xlu1 %1881 }
 0xb78   : > { %2637 = vpow2.f32 %v1888_v56  ;;  %v1886_v59 = vsub.f32 %v1852_v40, %v1882_v58  ;;  %v1887_v60 = vsub.f32 %v1853_v32, %v1882_v58 }
 0xb79   : > { %2639 = vpow2.f32 %v1890_v57 }
 0xb7a   : > { %v1892_v61 = vmul.f32 1.442695, %v1886_v59  ;;  %v1894_v62 = vmul.f32 1.442695, %v1887_v60 }
 0xb7c   : > { %2641 = vpow2.f32 %v1892_v61 }
 0xb7d   : > { %2643 = vpow2.f32 %v1894_v62 }
 0xb7e   : > { %2645 = vpow2.f32 %v1868_v5 }
 0xb7f   : > { %2647 = vpow2.f32 %v1870_v6 }
 0xb85   : > { %v2638_v63 = vpop.eup %2637 }
 0xb86   : > { %v2640_v0 = vpop.eup %2639 }
 0xb87   : > { %v1896_v1 = vadd.f32 %v2640_v0, %v2638_v63 }
 0xb89   : > { %v2642_v2 = vpop.eup %2641  ;;  %1897 = vadd.xlane.f32.xlu0 %v1896_v1 }
 0xb8a   : > { %v2644_v3 = vpop.eup %2643 }
 0xb8b   : > { %v1899_v4 = vadd.f32 %v2644_v3, %v2642_v2  ;;  %v2646_v7 = vpop.eup %2645 }
 0xb8c   : > { %v1872_v11 = vmul.f32 %v2646_v7, %v1864_v10  ;;  %v2648_v46 = vpop.eup %2647 }
 0xb8d   : > { %1900 = vadd.xlane.f32.xlu1 %v1899_v4  ;;  %v1873_v14 = vmul.f32 %v2648_v46, %v1865_v9 }
 0xc12   : > { %v1898_v50 = vpop.xlane.xlu0 %1897 }
 0xc13   : > { %v1902_v12 = vadd.f32 %v1898_v50, %v1872_v11 }
 0xc15   : > { %1905 = vst.msk [vmem:[%s3434_s13] sm:$0xff] %vm595_vm2, %v1902_v12 }
 0xc16   : > { %v1901_v16 = vpop.xlane.xlu1 %1900 }
 0xc17   : > { %v1903_v17 = vadd.f32 %v1901_v16, %v1873_v14 }
 0xc19   : > { %1906 = vst.msk [vmem:[%s3434_s13 + $0x8] sm:$0xff] %vm595_vm2, %v1903_v17 }
 0xc1a PF: > { %p2245_p7 = scmp.gt.s32.totalorder %s3455_s2, 500 }
 0xc1c   : > { %1912 = sbr.rel (%p2245_p7) target bundleno = 3537 (0xdd1), region = 108 }
 0xc21   : > { %v1915_v18 = vmax.f32 %v3446_v20, %v3448_v23  ;;  %v1918_v19 = vmax.f32 %v3450_v8, %v3452_v24  ;;  %v2987_v21 = vmov 0   ;;  %v1913_v13 = vld [vmem:[%s3428_s16] sm:$0xff]  ;;  %v1914_v25 = vld [vmem:[%s3428_s16 + $0x8] sm:$0xff] }
 0xc22   : > { %2649 = vset.pattern.permute.xlu1 %v2987_v21  ;;  %2650 = vset.pattern.permute.xlu0 %v2987_v21  ;;  %v1923_v45 = vld [vmem:[%s3434_s13] sm:$0xff]  ;;  %v1924_v51 = vld [vmem:[%s3434_s13 + $0x8] sm:$0xff] }
 0xc23   : > { %1916 = vmax.xlane.f32.xlu0 %v1915_v18 }
 0xc27   : > { %1919 = vmax.xlane.f32.xlu0 %v1918_v19 }
 0xcac   : > { %v1917_v22 = vpop.xlane.xlu0 %1916 }
 0xcad   : > { %v1921_v15 = vmax.f32 %v1913_v13, %v1917_v22 }
 0xcaf   : > { %v1925_v26 = vsub.f32 %v1913_v13, %v1921_v15  ;;  %1966 = vst.msk [vmem:[%s3428_s16] sm:$0xff] %vm595_vm2, %v1921_v15  ;;  %1935 = vperm.xlu1 %2649, %v1921_v15  }
 0xcb0   : > { %v1920_v27 = vpop.xlane.xlu0 %1919 }
 0xcb1   : > { %v1922_v29 = vmax.f32 %v1914_v25, %v1920_v27 }
 0xcb3   : > { %v1926_v30 = vsub.f32 %v1914_v25, %v1922_v29  ;;  %1967 = vst.msk [vmem:[%s3428_s16 + $0x8] sm:$0xff] %vm595_vm2, %v1922_v29  ;;  %1940 = vperm.xlu1 %2649, %v1922_v29  }
 0xd2a   : > { %v1936_v31 = vpop.permute.xlu1 %1935 }
 0xd2b   : > { %v1943_v33 = vsub.f32 %v3446_v20, %v1936_v31  ;;  %v1944_v34 = vsub.f32 %v3448_v23, %v1936_v31 }
 0xd2d   : > { %v1947_v36 = vmul.f32 1.442695, %v1943_v33  ;;  %v1949_v37 = vmul.f32 1.442695, %v1944_v34 }
 0xd2e   : > { %v1941_v35 = vpop.permute.xlu1 %1940 }
 0xd2f   : > { %2651 = vpow2.f32 %v1947_v36  ;;  %v1945_v38 = vsub.f32 %v3450_v8, %v1941_v35  ;;  %v1946_v39 = vsub.f32 %v3452_v24, %v1941_v35  ;;  %v1927_v8 = vmul.f32 1.442695, %v1925_v26 }
 0xd30   : > { %2653 = vpow2.f32 %v1949_v37  ;;  %v1929_v24 = vmul.f32 1.442695, %v1926_v30 }
 0xd31   : > { %v1951_v40 = vmul.f32 1.442695, %v1945_v38  ;;  %v1953_v32 = vmul.f32 1.442695, %v1946_v39 }
 0xd33   : > { %2655 = vpow2.f32 %v1951_v40 }
 0xd34   : > { %2657 = vpow2.f32 %v1953_v32 }
 0xd35   : > { %2659 = vpow2.f32 %v1927_v8 }
 0xd36   : > { %2661 = vpow2.f32 %v1929_v24 }
 0xd3c   : > { %v2652_v41 = vpop.eup %2651 }
 0xd3d   : > { %v2654_v42 = vpop.eup %2653 }
 0xd3e   : > { %v1955_v20 = vadd.f32 %v2654_v42, %v2652_v41 }
 0xd40   : > { %v2656_v43 = vpop.eup %2655  ;;  %1956 = vadd.xlane.f32.xlu0 %v1955_v20 }
 0xd41   : > { %v2658_v23 = vpop.eup %2657 }
 0xd42   : > { %v1958_v44 = vadd.f32 %v2658_v23, %v2656_v43  ;;  %v2660_v28 = vpop.eup %2659 }
 0xd43   : > { %v1931_v47 = vmul.f32 %v2660_v28, %v1923_v45  ;;  %v2662_v48 = vpop.eup %2661 }
 0xd44   : > { %1959 = vadd.xlane.f32.xlu1 %v1958_v44  ;;  %v1932_v53 = vmul.f32 %v2662_v48, %v1924_v51 }
 0xdc9   : > { %v1957_v49 = vpop.xlane.xlu0 %1956 }
 0xdca   : > { %v1961_v52 = vadd.f32 %v1957_v49, %v1931_v47 }
 0xdcc   : > { %1964 = vst.msk [vmem:[%s3434_s13] sm:$0xff] %vm595_vm2, %v1961_v52 }
 0xdcd   : > { %v1960_v54 = vpop.xlane.xlu1 %1959 }
 0xdce   : > { %v1962_v55 = vadd.f32 %v1960_v54, %v1932_v53 }
 0xdd0   : > { %1965 = vst.msk [vmem:[%s3434_s13 + $0x8] sm:$0xff] %vm595_vm2, %v1962_v55 }
 0xdd1 PF: > { %s28_s26 = sadd.s32 1, %s2969_s26   ;;  %s3557_s21 = smov %s2953_s22 }
 0xdd2   : > { %p25_p5 = scmp.ge.s32.totalorder %s28_s26, 4   ;;  %s3558_s22 = smov %s2957_s23 }
 0xdd3   : > { %s3559_s23 = smov %s3215_s17  ;;  %s3560_s24 = smov %s2965_s25 }
 0xdd4   : > { %s3561_s25 = smov %s3563_s14  ;;  %27 = sbr.rel (!%p25_p5) target bundleno = 14 (0xe), region = 167 }
 0xdd9   :  { %2021 = vsyncpa [#allocation3], 1 }
 0xdda   :  { %2023 = vsyncpa [#allocation3 + $0x1], 1 }
 0xddb   :  { %2024 = vsyncpa [#allocation5], 1 }
 0xddc   :  { %2025 = vsyncpa [#allocation8], 1 }
 0xddd   :  { %2026 = vsyncpa [#allocation11], 1 }
 0xdde   :  { %2027 = vsyncpa [#allocation14], 1 }

</bundles_post_ra>
